<compile_context>
chip_gen: v7x
topology: tpu7x:2x2x1
jax: 0.10.0
libtpu: 0.0.40
codegen_flags: <defaults>
</compile_context>

<pallas_src>
import math
import functools

import numpy as np
import jax
import jax.numpy as jnp
from jax.experimental import pallas as pl
from jax.experimental.pallas import tpu as pltpu

EPS_BN = 1e-5
EPS_LN = 1e-5


def _layer_norm(x, g, b):
    mean = jnp.mean(x, axis=-1, keepdims=True)
    var = jnp.mean((x - mean) ** 2, axis=-1, keepdims=True)
    return (x - mean) * jax.lax.rsqrt(var + EPS_LN) * g + b


# ----------------------------- the fused kernel (grid over encoder layers) -----------------------------

def _block_kernel(x_ref, mtap_ref, stap_ref, bng_ref, bnb_ref,
                  hsum_ref, hexp_ref,
                  wqkv_ref, bqkv_ref, wo_ref, bo_ref,
                  w1_ref, b1_ref, w2_ref, b2_ref,
                  ln1g_ref, ln1b_ref, ln2g_ref, ln2b_ref,
                  o_ref, xcarry_ref,
                  *, S, B, k, nlayers, add_identity):
    f32 = jnp.float32
    bf16 = jnp.bfloat16
    E = o_ref.shape[-1]            # Lout == d_model
    layer = pl.program_id(0)

    # ---------------- step 0: Conv1d (no bias) + BatchNorm1d (batch stats) + Mish ----------------
    @pl.when(layer == 0)
    def _():
        xb = x_ref[...].astype(bf16)                                   # (N*inp, L)
        y = None
        for j in range(k):
            # shift/stride first (exact 0/1 matrix -> lossless bf16), then block-diag channel mix
            t = jnp.dot(xb, stap_ref[j], preferred_element_type=f32)          # (N*inp, Lout)
            z = jnp.dot(mtap_ref[j], t.astype(bf16), preferred_element_type=f32)  # (N*oup, Lout)
            y = z if y is None else y + z

        # train-mode batch stats per channel: sum rows of the same channel via sublane rolls (XLU)
        inv_cnt = 1.0 / float(S * E)
        ysum = y
        for dn in range(1, S):
            ysum = ysum + pltpu.roll(y, shift=dn * B, axis=0)
        mean = jnp.sum(ysum, axis=-1, keepdims=True) * inv_cnt                # per-row (= per-channel)
        d = y - mean
        dsq = d * d
        vsum = dsq
        for dn in range(1, S):
            vsum = vsum + pltpu.roll(dsq, shift=dn * B, axis=0)
        var = jnp.sum(vsum, axis=-1, keepdims=True) * inv_cnt                 # biased variance
        yhat = d * jax.lax.rsqrt(var + EPS_BN) * bng_ref[...] + bnb_ref[...]
        softplus = jnp.maximum(yhat, 0.0) + jnp.log1p(jnp.exp(-jnp.abs(yhat)))
        xcarry_ref[...] = yhat * jnp.tanh(softplus)                           # Mish, (S*B, E)

    # ---------------- one post-norm TransformerEncoderLayer per grid step ----------------
    x2d = xcarry_ref[...]                       # (S*B, E) f32 carry
    hs = hsum_ref[...]                          # (E, H) bf16   head segment-sum map
    he = hexp_ref[...]                          # (H, E) bf16   per-head broadcast map

    xb = x2d.astype(bf16)
    qkv = jnp.dot(xb, wqkv_ref[0], preferred_element_type=f32) + bqkv_ref[0]  # (S*B, 3E)
    q = qkv[:, 0:E]                             # 1/sqrt(head_dim) folded into Wq/bq
    kk = qkv[:, E:2 * E]
    v = qkv[:, 2 * E:3 * E]

    # online softmax over the S key offsets (cyclic sublane rolls, same batch row)
    s0 = jnp.dot((q * kk).astype(bf16), hs, preferred_element_type=f32)       # (S*B, H)
    m_run = s0
    denom = jnp.ones_like(s0)
    acc = v
    for dj in range(1, S):
        kd = pltpu.roll(kk, shift=dj * B, axis=0)
        vd = pltpu.roll(v, shift=dj * B, axis=0)
        s_h = jnp.dot((q * kd).astype(bf16), hs, preferred_element_type=f32)  # (S*B, H)
        m_new = jnp.maximum(m_run, s_h)
        alpha = jnp.exp(m_run - m_new)
        p = jnp.exp(s_h - m_new)
        denom = alpha * denom + p
        acc = (jnp.dot(alpha.astype(bf16), he, preferred_element_type=f32) * acc
               + jnp.dot(p.astype(bf16), he, preferred_element_type=f32) * vd)
        m_run = m_new
    inv = pl.reciprocal(denom, approx=True)                                    # EUP, free slot
    attn = acc * jnp.dot(inv.astype(bf16), he, preferred_element_type=f32)

    attn_out = jnp.dot(attn.astype(bf16), wo_ref[0], preferred_element_type=f32) + bo_ref[0]
    # TODO(synk): dropout(p=0.1) treated as identity (eval-mode equivalent)
    x2d = _layer_norm(x2d + attn_out, ln1g_ref[0], ln1b_ref[0])

    h1 = jnp.dot(x2d.astype(bf16), w1_ref[0], preferred_element_type=f32) + b1_ref[0]
    h1 = jnp.maximum(h1, 0.0)
    h2 = jnp.dot(h1.astype(bf16), w2_ref[0], preferred_element_type=f32) + b2_ref[0]
    x2d = _layer_norm(x2d + h2, ln2g_ref[0], ln2b_ref[0])
    xcarry_ref[...] = x2d

    @pl.when(layer == nlayers - 1)
    def _():
        res = x2d
        if add_identity:
            res = res + x_ref[...]              # residual of the raw input (inp==oup, Lout==L)
        o_ref[...] = res


# ----------------------------- wrapper -----------------------------

def _const_spec(shape):
    zeros = (0,) * len(shape)
    return pl.BlockSpec(tuple(shape), lambda l, _z=zeros: _z)


def _layer_spec(shape):
    rest = tuple(shape[1:])
    zeros = (0,) * len(rest)
    return pl.BlockSpec((1,) + rest, lambda l, _z=zeros: (l,) + _z)


def block_forward(x, params, *, inp, oup, k, stride, nhead, nlayers, shortcut):
    N, C_in, L = x.shape
    assert C_in == inp
    pad = k // 2
    Lout = (L + 2 * pad - k) // stride + 1
    E = Lout
    assert E % nhead == 0, "output dim must be divisible by nhead"
    hd = E // nhead
    S, B = N, oup                       # transformer: seq = batch-size N, batch = oup channels
    SB = S * B
    F = int(params["w1"].shape[-1])

    # ---- constant / weight-only operators (built once; 0/1 maps are exact in bf16) ----
    w = params["conv_w"]                                              # (oup, inp, k)
    eye_n = jnp.eye(N, dtype=jnp.float32)
    mtaps = jnp.stack([jnp.kron(eye_n, w[:, :, j]) for j in range(k)],
                      axis=0).astype(jnp.bfloat16)                    # (k, N*oup, N*inp)

    staps_np = np.zeros((k, L, Lout), np.float32)                     # banded shift/stride matrices
    for j in range(k):
        for l in range(Lout):
            src = l * stride + j - pad
            if 0 <= src < L:
                staps_np[j, src, l] = 1.0
    staps = jnp.asarray(staps_np, jnp.bfloat16)

    hsum_np = np.zeros((E, nhead), np.float32)                        # head segment-sum map
    for e in range(E):
        hsum_np[e, e // hd] = 1.0
    hsum = jnp.asarray(hsum_np, jnp.bfloat16)
    hexp = jnp.asarray(hsum_np.T, jnp.bfloat16)

    bn_g = jnp.tile(params["bn_g"], N).reshape(SB, 1)                 # per-row (= per-channel) affine
    bn_b = jnp.tile(params["bn_b"], N).reshape(SB, 1)

    scale = 1.0 / math.sqrt(hd)                                       # fold attn scale into Wq / bq
    wqkv = jnp.concatenate([params["wq"] * scale, params["wk"], params["wv"]],
                           axis=-1).astype(jnp.bfloat16)              # (nlayers, E, 3E)
    bqkv = jnp.concatenate([params["bq"] * scale, params["bk"], params["bv"]], axis=-1)
    wo = params["wo"].astype(jnp.bfloat16)
    w1 = params["w1"].astype(jnp.bfloat16)
    w2 = params["w2"].astype(jnp.bfloat16)

    x2 = x.reshape(N * C_in, L)                                       # free contiguous reshape
    add_identity = bool(shortcut and inp == oup and Lout == L)

    inputs = [x2, mtaps, staps, bn_g, bn_b, hsum, hexp,
              wqkv, bqkv, wo, params["bo"],
              w1, params["b1"], w2, params["b2"],
              params["ln1_g"], params["ln1_b"], params["ln2_g"], params["ln2_b"]]

    in_specs = [_const_spec(x2.shape), _const_spec(mtaps.shape), _const_spec(staps.shape),
                _const_spec(bn_g.shape), _const_spec(bn_b.shape),
                _const_spec(hsum.shape), _const_spec(hexp.shape),
                _layer_spec(wqkv.shape), _layer_spec(bqkv.shape),
                _layer_spec(wo.shape), _layer_spec(params["bo"].shape),
                _layer_spec(w1.shape), _layer_spec(params["b1"].shape),
                _layer_spec(w2.shape), _layer_spec(params["b2"].shape),
                _layer_spec(params["ln1_g"].shape), _layer_spec(params["ln1_b"].shape),
                _layer_spec(params["ln2_g"].shape), _layer_spec(params["ln2_b"].shape)]

    kern = functools.partial(_block_kernel, S=S, B=B, k=k, nlayers=nlayers,
                             add_identity=add_identity)

    # advisory cost model for the XLA scheduler
    conv_flops = 2 * k * ((N * inp) * L * Lout + SB * (N * inp) * Lout)
    layer_flops = (2 * SB * E * (3 * E)               # fused qkv projection
                   + 2 * SB * E * E                   # out projection
                   + 2 * 2 * SB * E * F               # FFN
                   + S * 2 * SB * E * nhead           # head segment-sum scores
                   + (2 * S + 1) * 2 * SB * nhead * E)  # per-head prob/scale broadcasts
    flops = conv_flops + nlayers * layer_flops
    trans = 3 * SB * E + nlayers * (2 * S * SB * nhead + 2 * SB * nhead)
    bytes_accessed = sum(int(a.size) * int(a.dtype.itemsize) for a in inputs) + SB * E * 4
    cost = pl.CostEstimate(flops=int(flops), transcendentals=int(trans),
                           bytes_accessed=int(bytes_accessed))

    out2d = pl.pallas_call(
        kern,
        out_shape=jax.ShapeDtypeStruct((SB, E), jnp.float32),
        grid=(nlayers,),
        in_specs=in_specs,
        out_specs=pl.BlockSpec((SB, E), lambda l: (0, 0)),
        scratch_shapes=[pltpu.VMEM((SB, E), jnp.float32)],        # activation carried across layers
        compiler_params=pltpu.CompilerParams(
            dimension_semantics=("arbitrary",),                   # layers are sequential (carry dep)
            vmem_limit_bytes=32 * 1024 * 1024),
        cost_estimate=cost,
    )(*inputs)

    return out2d.reshape(N, oup, Lout)


# ----------------------------- deterministic params -----------------------------

def init_params(key, *, inp, oup, k, d_model, nhead, nlayers, dim_ff=2048):
    E = d_model
    keys = jax.random.split(key, 7)

    def rnd(kk, shape, s=0.05):
        return s * jax.random.normal(kk, shape, jnp.float32)

    return {
        "conv_w": 0.1 * jax.random.normal(keys[0], (oup, inp, k), jnp.float32),
        "bn_g": jnp.ones((oup,), jnp.float32),
        "bn_b": jnp.zeros((oup,), jnp.float32),
        "wq": rnd(keys[1], (nlayers, E, E)),
        "wk": rnd(keys[2], (nlayers, E, E)),
        "wv": rnd(keys[3], (nlayers, E, E)),
        "wo": rnd(keys[4], (nlayers, E, E)),
        "w1": rnd(keys[5], (nlayers, E, dim_ff)),
        "w2": rnd(keys[6], (nlayers, dim_ff, E)),
        "bq": jnp.zeros((nlayers, 1, E), jnp.float32),
        "bk": jnp.zeros((nlayers, 1, E), jnp.float32),
        "bv": jnp.zeros((nlayers, 1, E), jnp.float32),
        "bo": jnp.zeros((nlayers, 1, E), jnp.float32),
        "b1": jnp.zeros((nlayers, 1, dim_ff), jnp.float32),
        "b2": jnp.zeros((nlayers, 1, E), jnp.float32),
        "ln1_g": jnp.ones((nlayers, 1, E), jnp.float32),
        "ln1_b": jnp.zeros((nlayers, 1, E), jnp.float32),
        "ln2_g": jnp.ones((nlayers, 1, E), jnp.float32),
        "ln2_b": jnp.zeros((nlayers, 1, E), jnp.float32),
    }


# ----------------------------- main -----------------------------

if __name__ == "__main__":
    # Block(inp=4, oup=4, k=3, shortcut=True, nhead=2, nlayers=2, stride=1)
    N, C_IN, L = 2, 4, 16
    OUP, K, STRIDE, NHEAD, NLAYERS, SHORTCUT = 4, 3, 1, 2, 2, True

    key = jax.random.PRNGKey(0)
    kx, kp = jax.random.split(key)
    x = jax.random.normal(kx, (N, C_IN, L), jnp.float32)

    # d_model for the transformer is the conv-output length (torch builds the layer
    # inside forward() using x.shape[2]).
    pad = K // 2
    L_out = (L + 2 * pad - K) // STRIDE + 1
    params = init_params(kp, inp=C_IN, oup=OUP, k=K, d_model=L_out,
                         nhead=NHEAD, nlayers=NLAYERS)

    fwd = jax.jit(functools.partial(block_forward, inp=C_IN, oup=OUP, k=K,
                                    stride=STRIDE, nhead=NHEAD, nlayers=NLAYERS,
                                    shortcut=SHORTCUT))
    out = jax.block_until_ready(fwd(x, params))
    assert out.shape == (N, OUP, L_out)
    assert bool(jnp.all(jnp.isfinite(out)))
    print("KERNEL_OK")
</pallas_src>

<mosaic_0001>
module attributes {stable_mosaic.version = 11 : i64} {
  func.func @_block_kernel(%arg0: i32, %arg1: memref<8x16xf32, #tpu.memory_space<vmem>>, %arg2: memref<3x8x8xbf16, #tpu.memory_space<vmem>>, %arg3: memref<3x16x16xbf16, #tpu.memory_space<vmem>>, %arg4: memref<8x1xf32, #tpu.memory_space<vmem>>, %arg5: memref<8x1xf32, #tpu.memory_space<vmem>>, %arg6: memref<16x2xbf16, #tpu.memory_space<vmem>>, %arg7: memref<2x16xbf16, #tpu.memory_space<vmem>>, %arg8: memref<1x16x48xbf16, #tpu.memory_space<vmem>>, %arg9: memref<1x1x48xf32, #tpu.memory_space<vmem>>, %arg10: memref<1x16x16xbf16, #tpu.memory_space<vmem>>, %arg11: memref<1x1x16xf32, #tpu.memory_space<vmem>>, %arg12: memref<1x16x2048xbf16, #tpu.memory_space<vmem>>, %arg13: memref<1x1x2048xf32, #tpu.memory_space<vmem>>, %arg14: memref<1x2048x16xbf16, #tpu.memory_space<vmem>>, %arg15: memref<1x1x16xf32, #tpu.memory_space<vmem>>, %arg16: memref<1x1x16xf32, #tpu.memory_space<vmem>>, %arg17: memref<1x1x16xf32, #tpu.memory_space<vmem>>, %arg18: memref<1x1x16xf32, #tpu.memory_space<vmem>>, %arg19: memref<1x1x16xf32, #tpu.memory_space<vmem>>, %arg20: memref<8x16xf32, #tpu.memory_space<vmem>>, %arg21: memref<8x16xf32, #tpu.memory_space<vmem>>) attributes {dimension_semantics = [#tpu.dimension_semantics<arbitrary>], iteration_bounds = array<i64: 2>, scalar_prefetch = 0 : i64, scratch_operands = 1 : i64, tpu.core_type = #tpu.core_type<tc>, window_params = [{pipeline_mode = #tpu.pipeline_mode<synchronous>, transform_indices = @transform_0, window_bounds = array<i64: 8, 16>}, {pipeline_mode = #tpu.pipeline_mode<synchronous>, transform_indices = @transform_1, window_bounds = array<i64: 3, 8, 8>}, {pipeline_mode = #tpu.pipeline_mode<synchronous>, transform_indices = @transform_2, window_bounds = array<i64: 3, 16, 16>}, {pipeline_mode = #tpu.pipeline_mode<synchronous>, transform_indices = @transform_3, window_bounds = array<i64: 8, 1>}, {pipeline_mode = #tpu.pipeline_mode<synchronous>, transform_indices = @transform_4, window_bounds = array<i64: 8, 1>}, {pipeline_mode = #tpu.pipeline_mode<synchronous>, transform_indices = @transform_5, window_bounds = array<i64: 16, 2>}, {pipeline_mode = #tpu.pipeline_mode<synchronous>, transform_indices = @transform_6, window_bounds = array<i64: 2, 16>}, {transform_indices = @transform_7, window_bounds = array<i64: 1, 16, 48>}, {transform_indices = @transform_8, window_bounds = array<i64: 1, 1, 48>}, {transform_indices = @transform_9, window_bounds = array<i64: 1, 16, 16>}, {transform_indices = @transform_10, window_bounds = array<i64: 1, 1, 16>}, {transform_indices = @transform_11, window_bounds = array<i64: 1, 16, 2048>}, {transform_indices = @transform_12, window_bounds = array<i64: 1, 1, 2048>}, {transform_indices = @transform_13, window_bounds = array<i64: 1, 2048, 16>}, {transform_indices = @transform_14, window_bounds = array<i64: 1, 1, 16>}, {transform_indices = @transform_15, window_bounds = array<i64: 1, 1, 16>}, {transform_indices = @transform_16, window_bounds = array<i64: 1, 1, 16>}, {transform_indices = @transform_17, window_bounds = array<i64: 1, 1, 16>}, {transform_indices = @transform_18, window_bounds = array<i64: 1, 1, 16>}, {pipeline_mode = #tpu.pipeline_mode<synchronous>, transform_indices = @transform_19, window_bounds = array<i64: 8, 16>}]} {
    %c0_i32 = arith.constant 0 : i32
    %0 = arith.cmpi eq, %arg0, %c0_i32 : i32
    %1 = arith.extui %0 : i1 to i32
    %c0_i32_0 = arith.constant 0 : i32
    %2 = arith.cmpi ne, %1, %c0_i32_0 : i32
    scf.if %2 {
      %c0_66 = arith.constant 0 : index
      %c0_67 = arith.constant 0 : index
      %128 = vector.load %arg1[%c0_66, %c0_67] : memref<8x16xf32, #tpu.memory_space<vmem>>, vector<8x16xf32>
      %129 = arith.truncf %128 : vector<8x16xf32> to vector<8x16xbf16>
      %c0_68 = arith.constant 0 : index
      %c0_69 = arith.constant 0 : index
      %c0_70 = arith.constant 0 : index
      %130 = vector.load %arg3[%c0_68, %c0_69, %c0_70] : memref<3x16x16xbf16, #tpu.memory_space<vmem>>, vector<1x16x16xbf16>
      %131 = vector.shape_cast %130 : vector<1x16x16xbf16> to vector<16x16xbf16>
      %cst_71 = arith.constant dense<0.000000e+00> : vector<8x16xf32>
      %132 = tpu.matmul %129, %131, %cst_71 {dimension_numbers = #tpu.dot_dimension_numbers<[1], [0], [0], [1], [0, 0, 1, 1], [], []>} : vector<8x16xbf16>, vector<16x16xbf16>, vector<8x16xf32> -> vector<8x16xf32>
      %c0_72 = arith.constant 0 : index
      %c0_73 = arith.constant 0 : index
      %c0_74 = arith.constant 0 : index
      %133 = vector.load %arg2[%c0_72, %c0_73, %c0_74] : memref<3x8x8xbf16, #tpu.memory_space<vmem>>, vector<1x8x8xbf16>
      %134 = vector.shape_cast %133 : vector<1x8x8xbf16> to vector<8x8xbf16>
      %135 = arith.truncf %132 : vector<8x16xf32> to vector<8x16xbf16>
      %cst_75 = arith.constant dense<0.000000e+00> : vector<8x16xf32>
      %136 = tpu.matmul %134, %135, %cst_75 {dimension_numbers = #tpu.dot_dimension_numbers<[1], [0], [0], [1], [0, 0, 1, 1], [], []>} : vector<8x8xbf16>, vector<8x16xbf16>, vector<8x16xf32> -> vector<8x16xf32>
      %c1 = arith.constant 1 : index
      %c0_76 = arith.constant 0 : index
      %c0_77 = arith.constant 0 : index
      %137 = vector.load %arg3[%c1, %c0_76, %c0_77] : memref<3x16x16xbf16, #tpu.memory_space<vmem>>, vector<1x16x16xbf16>
      %138 = vector.shape_cast %137 : vector<1x16x16xbf16> to vector<16x16xbf16>
      %cst_78 = arith.constant dense<0.000000e+00> : vector<8x16xf32>
      %139 = tpu.matmul %129, %138, %cst_78 {dimension_numbers = #tpu.dot_dimension_numbers<[1], [0], [0], [1], [0, 0, 1, 1], [], []>} : vector<8x16xbf16>, vector<16x16xbf16>, vector<8x16xf32> -> vector<8x16xf32>
      %c1_79 = arith.constant 1 : index
      %c0_80 = arith.constant 0 : index
      %c0_81 = arith.constant 0 : index
      %140 = vector.load %arg2[%c1_79, %c0_80, %c0_81] : memref<3x8x8xbf16, #tpu.memory_space<vmem>>, vector<1x8x8xbf16>
      %141 = vector.shape_cast %140 : vector<1x8x8xbf16> to vector<8x8xbf16>
      %142 = arith.truncf %139 : vector<8x16xf32> to vector<8x16xbf16>
      %cst_82 = arith.constant dense<0.000000e+00> : vector<8x16xf32>
      %143 = tpu.matmul %141, %142, %cst_82 {dimension_numbers = #tpu.dot_dimension_numbers<[1], [0], [0], [1], [0, 0, 1, 1], [], []>} : vector<8x8xbf16>, vector<8x16xbf16>, vector<8x16xf32> -> vector<8x16xf32>
      %144 = arith.addf %136, %143 : vector<8x16xf32>
      %c2 = arith.constant 2 : index
      %c0_83 = arith.constant 0 : index
      %c0_84 = arith.constant 0 : index
      %145 = vector.load %arg3[%c2, %c0_83, %c0_84] : memref<3x16x16xbf16, #tpu.memory_space<vmem>>, vector<1x16x16xbf16>
      %146 = vector.shape_cast %145 : vector<1x16x16xbf16> to vector<16x16xbf16>
      %cst_85 = arith.constant dense<0.000000e+00> : vector<8x16xf32>
      %147 = tpu.matmul %129, %146, %cst_85 {dimension_numbers = #tpu.dot_dimension_numbers<[1], [0], [0], [1], [0, 0, 1, 1], [], []>} : vector<8x16xbf16>, vector<16x16xbf16>, vector<8x16xf32> -> vector<8x16xf32>
      %c2_86 = arith.constant 2 : index
      %c0_87 = arith.constant 0 : index
      %c0_88 = arith.constant 0 : index
      %148 = vector.load %arg2[%c2_86, %c0_87, %c0_88] : memref<3x8x8xbf16, #tpu.memory_space<vmem>>, vector<1x8x8xbf16>
      %149 = vector.shape_cast %148 : vector<1x8x8xbf16> to vector<8x8xbf16>
      %150 = arith.truncf %147 : vector<8x16xf32> to vector<8x16xbf16>
      %cst_89 = arith.constant dense<0.000000e+00> : vector<8x16xf32>
      %151 = tpu.matmul %149, %150, %cst_89 {dimension_numbers = #tpu.dot_dimension_numbers<[1], [0], [0], [1], [0, 0, 1, 1], [], []>} : vector<8x8xbf16>, vector<8x16xbf16>, vector<8x16xf32> -> vector<8x16xf32>
      %152 = arith.addf %144, %151 : vector<8x16xf32>
      %c4_i32_90 = arith.constant 4 : i32
      %153 = tpu.dynamic_rotate %152 by %c4_i32_90 dim 0 : vector<8x16xf32>, i32 -> vector<8x16xf32>
      %154 = arith.addf %152, %153 : vector<8x16xf32>
      %cst_91 = arith.constant dense<0.000000e+00> : vector<8xf32>
      %155 = vector.multi_reduction <add>, %154, %cst_91 [1] : vector<8x16xf32> to vector<8xf32>
      %156 = vector.shape_cast %155 : vector<8xf32> to vector<8x1xf32>
      %cst_92 = arith.constant 3.125000e-02 : f32
      %157 = vector.broadcast %cst_92 : f32 to vector<8x1xf32>
      %158 = arith.mulf %156, %157 : vector<8x1xf32>
      %159 = vector.broadcast %158 : vector<8x1xf32> to vector<8x16xf32>
      %160 = arith.subf %152, %159 : vector<8x16xf32>
      %161 = arith.mulf %160, %160 : vector<8x16xf32>
      %c4_i32_93 = arith.constant 4 : i32
      %162 = tpu.dynamic_rotate %161 by %c4_i32_93 dim 0 : vector<8x16xf32>, i32 -> vector<8x16xf32>
      %163 = arith.addf %161, %162 : vector<8x16xf32>
      %cst_94 = arith.constant dense<0.000000e+00> : vector<8xf32>
      %164 = vector.multi_reduction <add>, %163, %cst_94 [1] : vector<8x16xf32> to vector<8xf32>
      %165 = vector.shape_cast %164 : vector<8xf32> to vector<8x1xf32>
      %cst_95 = arith.constant 3.125000e-02 : f32
      %166 = vector.broadcast %cst_95 : f32 to vector<8x1xf32>
      %167 = arith.mulf %165, %166 : vector<8x1xf32>
      %cst_96 = arith.constant 9.99999974E-6 : f32
      %168 = vector.broadcast %cst_96 : f32 to vector<8x1xf32>
      %169 = arith.addf %167, %168 : vector<8x1xf32>
      %170 = math.rsqrt %169 : vector<8x1xf32>
      %171 = vector.broadcast %170 : vector<8x1xf32> to vector<8x16xf32>
      %172 = arith.mulf %160, %171 : vector<8x16xf32>
      %c0_97 = arith.constant 0 : index
      %c0_98 = arith.constant 0 : index
      %173 = vector.load %arg4[%c0_97, %c0_98] : memref<8x1xf32, #tpu.memory_space<vmem>>, vector<8x1xf32>
      %174 = vector.broadcast %173 : vector<8x1xf32> to vector<8x16xf32>
      %175 = arith.mulf %172, %174 : vector<8x16xf32>
      %c0_99 = arith.constant 0 : index
      %c0_100 = arith.constant 0 : index
      %176 = vector.load %arg5[%c0_99, %c0_100] : memref<8x1xf32, #tpu.memory_space<vmem>>, vector<8x1xf32>
      %177 = vector.broadcast %176 : vector<8x1xf32> to vector<8x16xf32>
      %178 = arith.addf %175, %177 : vector<8x16xf32>
      %cst_101 = arith.constant 0.000000e+00 : f32
      %179 = vector.broadcast %cst_101 : f32 to vector<8x16xf32>
      %180 = arith.maximumf %178, %179 : vector<8x16xf32>
      %181 = math.absf %178 : vector<8x16xf32>
      %cst_102 = arith.constant 0.000000e+00 : f32
      %182 = vector.broadcast %cst_102 : f32 to vector<8x16xf32>
      %183 = arith.subf %182, %181 : vector<8x16xf32>
      %184 = math.exp %183 : vector<8x16xf32>
      %185 = math.log1p %184 : vector<8x16xf32>
      %186 = arith.addf %180, %185 : vector<8x16xf32>
      %187 = math.tanh %186 : vector<8x16xf32>
      %188 = arith.mulf %178, %187 : vector<8x16xf32>
      %c0_103 = arith.constant 0 : index
      %c0_104 = arith.constant 0 : index
      %189 = vector.load %arg21[%c0_103, %c0_104] : memref<8x16xf32, #tpu.memory_space<vmem>>, vector<8x16xf32>
      tpu.vector_store %arg21[%c0_103, %c0_104], %188 {strides = array<i32>} : memref<8x16xf32, #tpu.memory_space<vmem>>, vector<8x16xf32>,
    } else {
    }
    %c0 = arith.constant 0 : index
    %c0_1 = arith.constant 0 : index
    %3 = vector.load %arg21[%c0, %c0_1] : memref<8x16xf32, #tpu.memory_space<vmem>>, vector<8x16xf32>
    %c0_2 = arith.constant 0 : index
    %c0_3 = arith.constant 0 : index
    %4 = vector.load %arg6[%c0_2, %c0_3] : memref<16x2xbf16, #tpu.memory_space<vmem>>, vector<16x2xbf16>
    %c0_4 = arith.constant 0 : index
    %c0_5 = arith.constant 0 : index
    %5 = vector.load %arg7[%c0_4, %c0_5] : memref<2x16xbf16, #tpu.memory_space<vmem>>, vector<2x16xbf16>
    %6 = arith.truncf %3 : vector<8x16xf32> to vector<8x16xbf16>
    %c0_6 = arith.constant 0 : index
    %c0_7 = arith.constant 0 : index
    %c0_8 = arith.constant 0 : index
    %7 = vector.load %arg8[%c0_6, %c0_7, %c0_8] : memref<1x16x48xbf16, #tpu.memory_space<vmem>>, vector<1x16x48xbf16>
    %8 = vector.shape_cast %7 : vector<1x16x48xbf16> to vector<16x48xbf16>
    %cst = arith.constant dense<0.000000e+00> : vector<8x48xf32>
    %9 = tpu.matmul %6, %8, %cst {dimension_numbers = #tpu.dot_dimension_numbers<[1], [0], [0], [1], [0, 0, 1, 1], [], []>} : vector<8x16xbf16>, vector<16x48xbf16>, vector<8x48xf32> -> vector<8x48xf32>
    %c0_9 = arith.constant 0 : index
    %c0_10 = arith.constant 0 : index
    %c0_11 = arith.constant 0 : index
    %10 = vector.load %arg9[%c0_9, %c0_10, %c0_11] : memref<1x1x48xf32, #tpu.memory_space<vmem>>, vector<1x1x48xf32>
    %11 = vector.shape_cast %10 : vector<1x1x48xf32> to vector<1x48xf32>
    %12 = vector.broadcast %11 : vector<1x48xf32> to vector<8x48xf32>
    %13 = arith.addf %9, %12 : vector<8x48xf32>
    %14 = vector.extract_strided_slice %13 {offsets = [0, 0], sizes = [8, 16], strides = [1, 1]} : vector<8x48xf32> to vector<8x16xf32>
    %15 = vector.extract_strided_slice %13 {offsets = [0, 16], sizes = [8, 16], strides = [1, 1]} : vector<8x48xf32> to vector<8x16xf32>
    %16 = vector.extract_strided_slice %13 {offsets = [0, 32], sizes = [8, 16], strides = [1, 1]} : vector<8x48xf32> to vector<8x16xf32>
    %17 = arith.mulf %14, %15 : vector<8x16xf32>
    %18 = arith.truncf %17 : vector<8x16xf32> to vector<8x16xbf16>
    %cst_12 = arith.constant dense<0.000000e+00> : vector<8x2xf32>
    %19 = tpu.matmul %18, %4, %cst_12 {dimension_numbers = #tpu.dot_dimension_numbers<[1], [0], [0], [1], [0, 0, 1, 1], [], []>} : vector<8x16xbf16>, vector<16x2xbf16>, vector<8x2xf32> -> vector<8x2xf32>
    %cst_13 = arith.constant 1.000000e+00 : f32
    %20 = vector.broadcast %cst_13 : f32 to vector<8x2xf32>
    %c4_i32 = arith.constant 4 : i32
    %21 = tpu.dynamic_rotate %15 by %c4_i32 dim 0 : vector<8x16xf32>, i32 -> vector<8x16xf32>
    %c4_i32_14 = arith.constant 4 : i32
    %22 = tpu.dynamic_rotate %16 by %c4_i32_14 dim 0 : vector<8x16xf32>, i32 -> vector<8x16xf32>
    %23 = arith.mulf %14, %21 : vector<8x16xf32>
    %24 = arith.truncf %23 : vector<8x16xf32> to vector<8x16xbf16>
    %cst_15 = arith.constant dense<0.000000e+00> : vector<8x2xf32>
    %25 = tpu.matmul %24, %4, %cst_15 {dimension_numbers = #tpu.dot_dimension_numbers<[1], [0], [0], [1], [0, 0, 1, 1], [], []>} : vector<8x16xbf16>, vector<16x2xbf16>, vector<8x2xf32> -> vector<8x2xf32>
    %26 = arith.maximumf %19, %25 : vector<8x2xf32>
    %27 = arith.subf %19, %26 : vector<8x2xf32>
    %28 = math.exp %27 : vector<8x2xf32>
    %29 = arith.subf %25, %26 : vector<8x2xf32>
    %30 = math.exp %29 : vector<8x2xf32>
    %31 = arith.mulf %28, %20 : vector<8x2xf32>
    %32 = arith.addf %31, %30 : vector<8x2xf32>
    %33 = arith.truncf %28 : vector<8x2xf32> to vector<8x2xbf16>
    %cst_16 = arith.constant dense<0.000000e+00> : vector<8x16xf32>
    %34 = tpu.matmul %33, %5, %cst_16 {dimension_numbers = #tpu.dot_dimension_numbers<[1], [0], [0], [1], [0, 0, 1, 1], [], []>} : vector<8x2xbf16>, vector<2x16xbf16>, vector<8x16xf32> -> vector<8x16xf32>
    %35 = arith.mulf %34, %16 : vector<8x16xf32>
    %36 = arith.truncf %30 : vector<8x2xf32> to vector<8x2xbf16>
    %cst_17 = arith.constant dense<0.000000e+00> : vector<8x16xf32>
    %37 = tpu.matmul %36, %5, %cst_17 {dimension_numbers = #tpu.dot_dimension_numbers<[1], [0], [0], [1], [0, 0, 1, 1], [], []>} : vector<8x2xbf16>, vector<2x16xbf16>, vector<8x16xf32> -> vector<8x16xf32>
    %38 = arith.mulf %37, %22 : vector<8x16xf32>
    %39 = arith.addf %35, %38 : vector<8x16xf32>
    %40 = tpu.reciprocal %32 {approx = true} : vector<8x2xf32> -> vector<8x2xf32>
    %41 = arith.truncf %40 : vector<8x2xf32> to vector<8x2xbf16>
    %cst_18 = arith.constant dense<0.000000e+00> : vector<8x16xf32>
    %42 = tpu.matmul %41, %5, %cst_18 {dimension_numbers = #tpu.dot_dimension_numbers<[1], [0], [0], [1], [0, 0, 1, 1], [], []>} : vector<8x2xbf16>, vector<2x16xbf16>, vector<8x16xf32> -> vector<8x16xf32>
    %43 = arith.mulf %39, %42 : vector<8x16xf32>
    %44 = arith.truncf %43 : vector<8x16xf32> to vector<8x16xbf16>
    %c0_19 = arith.constant 0 : index
    %c0_20 = arith.constant 0 : index
    %c0_21 = arith.constant 0 : index
    %45 = vector.load %arg10[%c0_19, %c0_20, %c0_21] : memref<1x16x16xbf16, #tpu.memory_space<vmem>>, vector<1x16x16xbf16>
    %46 = vector.shape_cast %45 : vector<1x16x16xbf16> to vector<16x16xbf16>
    %cst_22 = arith.constant dense<0.000000e+00> : vector<8x16xf32>
    %47 = tpu.matmul %44, %46, %cst_22 {dimension_numbers = #tpu.dot_dimension_numbers<[1], [0], [0], [1], [0, 0, 1, 1], [], []>} : vector<8x16xbf16>, vector<16x16xbf16>, vector<8x16xf32> -> vector<8x16xf32>
    %c0_23 = arith.constant 0 : index
    %c0_24 = arith.constant 0 : index
    %c0_25 = arith.constant 0 : index
    %48 = vector.load %arg11[%c0_23, %c0_24, %c0_25] : memref<1x1x16xf32, #tpu.memory_space<vmem>>, vector<1x1x16xf32>
    %49 = vector.shape_cast %48 : vector<1x1x16xf32> to vector<1x16xf32>
    %50 = vector.broadcast %49 : vector<1x16xf32> to vector<8x16xf32>
    %51 = arith.addf %47, %50 : vector<8x16xf32>
    %52 = arith.addf %3, %51 : vector<8x16xf32>
    %c0_26 = arith.constant 0 : index
    %c0_27 = arith.constant 0 : index
    %c0_28 = arith.constant 0 : index
    %53 = vector.load %arg16[%c0_26, %c0_27, %c0_28] : memref<1x1x16xf32, #tpu.memory_space<vmem>>, vector<1x1x16xf32>
    %54 = vector.shape_cast %53 : vector<1x1x16xf32> to vector<1x16xf32>
    %c0_29 = arith.constant 0 : index
    %c0_30 = arith.constant 0 : index
    %c0_31 = arith.constant 0 : index
    %55 = vector.load %arg17[%c0_29, %c0_30, %c0_31] : memref<1x1x16xf32, #tpu.memory_space<vmem>>, vector<1x1x16xf32>
    %56 = vector.shape_cast %55 : vector<1x1x16xf32> to vector<1x16xf32>
    %cst_32 = arith.constant dense<0.000000e+00> : vector<8xf32>
    %57 = vector.multi_reduction <add>, %52, %cst_32 [1] : vector<8x16xf32> to vector<8xf32>
    %58 = vector.shape_cast %57 : vector<8xf32> to vector<8x1xf32>
    %cst_33 = arith.constant 1.600000e+01 : f32
    %59 = vector.broadcast %cst_33 : f32 to vector<8x1xf32>
    %60 = arith.divf %58, %59 : vector<8x1xf32>
    %61 = vector.broadcast %60 : vector<8x1xf32> to vector<8x16xf32>
    %62 = arith.subf %52, %61 : vector<8x16xf32>
    %63 = arith.mulf %62, %62 : vector<8x16xf32>
    %cst_34 = arith.constant dense<0.000000e+00> : vector<8xf32>
    %64 = vector.multi_reduction <add>, %63, %cst_34 [1] : vector<8x16xf32> to vector<8xf32>
    %65 = vector.shape_cast %64 : vector<8xf32> to vector<8x1xf32>
    %cst_35 = arith.constant 1.600000e+01 : f32
    %66 = vector.broadcast %cst_35 : f32 to vector<8x1xf32>
    %67 = arith.divf %65, %66 : vector<8x1xf32>
    %68 = vector.broadcast %60 : vector<8x1xf32> to vector<8x16xf32>
    %69 = arith.subf %52, %68 : vector<8x16xf32>
    %cst_36 = arith.constant 9.99999974E-6 : f32
    %70 = vector.broadcast %cst_36 : f32 to vector<8x1xf32>
    %71 = arith.addf %67, %70 : vector<8x1xf32>
    %72 = math.rsqrt %71 : vector<8x1xf32>
    %73 = vector.broadcast %72 : vector<8x1xf32> to vector<8x16xf32>
    %74 = arith.mulf %69, %73 : vector<8x16xf32>
    %75 = vector.broadcast %54 : vector<1x16xf32> to vector<8x16xf32>
    %76 = arith.mulf %74, %75 : vector<8x16xf32>
    %77 = vector.broadcast %56 : vector<1x16xf32> to vector<8x16xf32>
    %78 = arith.addf %76, %77 : vector<8x16xf32>
    %79 = arith.truncf %78 : vector<8x16xf32> to vector<8x16xbf16>
    %c0_37 = arith.constant 0 : index
    %c0_38 = arith.constant 0 : index
    %c0_39 = arith.constant 0 : index
    %80 = vector.load %arg12[%c0_37, %c0_38, %c0_39] : memref<1x16x2048xbf16, #tpu.memory_space<vmem>>, vector<1x16x2048xbf16>
    %81 = vector.shape_cast %80 : vector<1x16x2048xbf16> to vector<16x2048xbf16>
    %cst_40 = arith.constant dense<0.000000e+00> : vector<8x2048xf32>
    %82 = tpu.matmul %79, %81, %cst_40 {dimension_numbers = #tpu.dot_dimension_numbers<[1], [0], [0], [1], [0, 0, 1, 1], [], []>} : vector<8x16xbf16>, vector<16x2048xbf16>, vector<8x2048xf32> -> vector<8x2048xf32>
    %c0_41 = arith.constant 0 : index
    %c0_42 = arith.constant 0 : index
    %c0_43 = arith.constant 0 : index
    %83 = vector.load %arg13[%c0_41, %c0_42, %c0_43] : memref<1x1x2048xf32, #tpu.memory_space<vmem>>, vector<1x1x2048xf32>
    %84 = vector.shape_cast %83 : vector<1x1x2048xf32> to vector<1x2048xf32>
    %85 = vector.broadcast %84 : vector<1x2048xf32> to vector<8x2048xf32>
    %86 = arith.addf %82, %85 : vector<8x2048xf32>
    %cst_44 = arith.constant 0.000000e+00 : f32
    %87 = vector.broadcast %cst_44 : f32 to vector<8x2048xf32>
    %88 = arith.maximumf %86, %87 : vector<8x2048xf32>
    %89 = arith.truncf %88 : vector<8x2048xf32> to vector<8x2048xbf16>
    %c0_45 = arith.constant 0 : index
    %c0_46 = arith.constant 0 : index
    %c0_47 = arith.constant 0 : index
    %90 = vector.load %arg14[%c0_45, %c0_46, %c0_47] : memref<1x2048x16xbf16, #tpu.memory_space<vmem>>, vector<1x2048x16xbf16>
    %91 = vector.shape_cast %90 : vector<1x2048x16xbf16> to vector<2048x16xbf16>
    %cst_48 = arith.constant dense<0.000000e+00> : vector<8x16xf32>
    %92 = tpu.matmul %89, %91, %cst_48 {dimension_numbers = #tpu.dot_dimension_numbers<[1], [0], [0], [1], [0, 0, 1, 1], [], []>} : vector<8x2048xbf16>, vector<2048x16xbf16>, vector<8x16xf32> -> vector<8x16xf32>
    %c0_49 = arith.constant 0 : index
    %c0_50 = arith.constant 0 : index
    %c0_51 = arith.constant 0 : index
    %93 = vector.load %arg15[%c0_49, %c0_50, %c0_51] : memref<1x1x16xf32, #tpu.memory_space<vmem>>, vector<1x1x16xf32>
    %94 = vector.shape_cast %93 : vector<1x1x16xf32> to vector<1x16xf32>
    %95 = vector.broadcast %94 : vector<1x16xf32> to vector<8x16xf32>
    %96 = arith.addf %92, %95 : vector<8x16xf32>
    %97 = arith.addf %78, %96 : vector<8x16xf32>
    %c0_52 = arith.constant 0 : index
    %c0_53 = arith.constant 0 : index
    %c0_54 = arith.constant 0 : index
    %98 = vector.load %arg18[%c0_52, %c0_53, %c0_54] : memref<1x1x16xf32, #tpu.memory_space<vmem>>, vector<1x1x16xf32>
    %99 = vector.shape_cast %98 : vector<1x1x16xf32> to vector<1x16xf32>
    %c0_55 = arith.constant 0 : index
    %c0_56 = arith.constant 0 : index
    %c0_57 = arith.constant 0 : index
    %100 = vector.load %arg19[%c0_55, %c0_56, %c0_57] : memref<1x1x16xf32, #tpu.memory_space<vmem>>, vector<1x1x16xf32>
    %101 = vector.shape_cast %100 : vector<1x1x16xf32> to vector<1x16xf32>
    %cst_58 = arith.constant dense<0.000000e+00> : vector<8xf32>
    %102 = vector.multi_reduction <add>, %97, %cst_58 [1] : vector<8x16xf32> to vector<8xf32>
    %103 = vector.shape_cast %102 : vector<8xf32> to vector<8x1xf32>
    %cst_59 = arith.constant 1.600000e+01 : f32
    %104 = vector.broadcast %cst_59 : f32 to vector<8x1xf32>
    %105 = arith.divf %103, %104 : vector<8x1xf32>
    %106 = vector.broadcast %105 : vector<8x1xf32> to vector<8x16xf32>
    %107 = arith.subf %97, %106 : vector<8x16xf32>
    %108 = arith.mulf %107, %107 : vector<8x16xf32>
    %cst_60 = arith.constant dense<0.000000e+00> : vector<8xf32>
    %109 = vector.multi_reduction <add>, %108, %cst_60 [1] : vector<8x16xf32> to vector<8xf32>
    %110 = vector.shape_cast %109 : vector<8xf32> to vector<8x1xf32>
    %cst_61 = arith.constant 1.600000e+01 : f32
    %111 = vector.broadcast %cst_61 : f32 to vector<8x1xf32>
    %112 = arith.divf %110, %111 : vector<8x1xf32>
    %113 = vector.broadcast %105 : vector<8x1xf32> to vector<8x16xf32>
    %114 = arith.subf %97, %113 : vector<8x16xf32>
    %cst_62 = arith.constant 9.99999974E-6 : f32
    %115 = vector.broadcast %cst_62 : f32 to vector<8x1xf32>
    %116 = arith.addf %112, %115 : vector<8x1xf32>
    %117 = math.rsqrt %116 : vector<8x1xf32>
    %118 = vector.broadcast %117 : vector<8x1xf32> to vector<8x16xf32>
    %119 = arith.mulf %114, %118 : vector<8x16xf32>
    %120 = vector.broadcast %99 : vector<1x16xf32> to vector<8x16xf32>
    %121 = arith.mulf %119, %120 : vector<8x16xf32>
    %122 = vector.broadcast %101 : vector<1x16xf32> to vector<8x16xf32>
    %123 = arith.addf %121, %122 : vector<8x16xf32>
    %c0_63 = arith.constant 0 : index
    %c0_64 = arith.constant 0 : index
    %124 = vector.load %arg21[%c0_63, %c0_64] : memref<8x16xf32, #tpu.memory_space<vmem>>, vector<8x16xf32>
    tpu.vector_store %arg21[%c0_63, %c0_64], %123 {strides = array<i32>} : memref<8x16xf32, #tpu.memory_space<vmem>>, vector<8x16xf32>,
    %c1_i32 = arith.constant 1 : i32
    %125 = arith.cmpi eq, %arg0, %c1_i32 : i32
    %126 = arith.extui %125 : i1 to i32
    %c0_i32_65 = arith.constant 0 : i32
    %127 = arith.cmpi ne, %126, %c0_i32_65 : i32
    scf.if %127 {
      %c0_66 = arith.constant 0 : index
      %c0_67 = arith.constant 0 : index
      %128 = vector.load %arg1[%c0_66, %c0_67] : memref<8x16xf32, #tpu.memory_space<vmem>>, vector<8x16xf32>
      %129 = arith.addf %123, %128 : vector<8x16xf32>
      %c0_68 = arith.constant 0 : index
      %c0_69 = arith.constant 0 : index
      %130 = vector.load %arg20[%c0_68, %c0_69] : memref<8x16xf32, #tpu.memory_space<vmem>>, vector<8x16xf32>
      tpu.vector_store %arg20[%c0_68, %c0_69], %129 {strides = array<i32>} : memref<8x16xf32, #tpu.memory_space<vmem>>, vector<8x16xf32>,
    } else {
    }
    return
  }
  func.func @transform_0(%arg0: i32) -> (i32, i32) {
    %c0_i32 = arith.constant 0 : i32
    %c0_i32_0 = arith.constant 0 : i32
    %c0_i32_1 = arith.constant 0 : i32
    return %c0_i32, %c0_i32_0 : i32, i32
  }
  func.func @transform_1(%arg0: i32) -> (i32, i32, i32) {
    %c0_i32 = arith.constant 0 : i32
    %c0_i32_0 = arith.constant 0 : i32
    %c0_i32_1 = arith.constant 0 : i32
    %c0_i32_2 = arith.constant 0 : i32
    return %c0_i32, %c0_i32_0, %c0_i32_1 : i32, i32, i32
  }
  func.func @transform_2(%arg0: i32) -> (i32, i32, i32) {
    %c0_i32 = arith.constant 0 : i32
    %c0_i32_0 = arith.constant 0 : i32
    %c0_i32_1 = arith.constant 0 : i32
    %c0_i32_2 = arith.constant 0 : i32
    return %c0_i32, %c0_i32_0, %c0_i32_1 : i32, i32, i32
  }
  func.func @transform_3(%arg0: i32) -> (i32, i32) {
    %c0_i32 = arith.constant 0 : i32
    %c0_i32_0 = arith.constant 0 : i32
    %c0_i32_1 = arith.constant 0 : i32
    return %c0_i32, %c0_i32_0 : i32, i32
  }
  func.func @transform_4(%arg0: i32) -> (i32, i32) {
    %c0_i32 = arith.constant 0 : i32
    %c0_i32_0 = arith.constant 0 : i32
    %c0_i32_1 = arith.constant 0 : i32
    return %c0_i32, %c0_i32_0 : i32, i32
  }
  func.func @transform_5(%arg0: i32) -> (i32, i32) {
    %c0_i32 = arith.constant 0 : i32
    %c0_i32_0 = arith.constant 0 : i32
    %c0_i32_1 = arith.constant 0 : i32
    return %c0_i32, %c0_i32_0 : i32, i32
  }
  func.func @transform_6(%arg0: i32) -> (i32, i32) {
    %c0_i32 = arith.constant 0 : i32
    %c0_i32_0 = arith.constant 0 : i32
    %c0_i32_1 = arith.constant 0 : i32
    return %c0_i32, %c0_i32_0 : i32, i32
  }
  func.func @transform_7(%arg0: i32) -> (i32, i32, i32) {
    %c0_i32 = arith.constant 0 : i32
    %c0_i32_0 = arith.constant 0 : i32
    %c0_i32_1 = arith.constant 0 : i32
    return %arg0, %c0_i32, %c0_i32_0 : i32, i32, i32
  }
  func.func @transform_8(%arg0: i32) -> (i32, i32, i32) {
    %c0_i32 = arith.constant 0 : i32
    %c0_i32_0 = arith.constant 0 : i32
    %c0_i32_1 = arith.constant 0 : i32
    return %arg0, %c0_i32, %c0_i32_0 : i32, i32, i32
  }
  func.func @transform_9(%arg0: i32) -> (i32, i32, i32) {
    %c0_i32 = arith.constant 0 : i32
    %c0_i32_0 = arith.constant 0 : i32
    %c0_i32_1 = arith.constant 0 : i32
    return %arg0, %c0_i32, %c0_i32_0 : i32, i32, i32
  }
  func.func @transform_10(%arg0: i32) -> (i32, i32, i32) {
    %c0_i32 = arith.constant 0 : i32
    %c0_i32_0 = arith.constant 0 : i32
    %c0_i32_1 = arith.constant 0 : i32
    return %arg0, %c0_i32, %c0_i32_0 : i32, i32, i32
  }
  func.func @transform_11(%arg0: i32) -> (i32, i32, i32) {
    %c0_i32 = arith.constant 0 : i32
    %c0_i32_0 = arith.constant 0 : i32
    %c0_i32_1 = arith.constant 0 : i32
    return %arg0, %c0_i32, %c0_i32_0 : i32, i32, i32
  }
  func.func @transform_12(%arg0: i32) -> (i32, i32, i32) {
    %c0_i32 = arith.constant 0 : i32
    %c0_i32_0 = arith.constant 0 : i32
    %c0_i32_1 = arith.constant 0 : i32
    return %arg0, %c0_i32, %c0_i32_0 : i32, i32, i32
  }
  func.func @transform_13(%arg0: i32) -> (i32, i32, i32) {
    %c0_i32 = arith.constant 0 : i32
    %c0_i32_0 = arith.constant 0 : i32
    %c0_i32_1 = arith.constant 0 : i32
    return %arg0, %c0_i32, %c0_i32_0 : i32, i32, i32
  }
  func.func @transform_14(%arg0: i32) -> (i32, i32, i32) {
    %c0_i32 = arith.constant 0 : i32
    %c0_i32_0 = arith.constant 0 : i32
    %c0_i32_1 = arith.constant 0 : i32
    return %arg0, %c0_i32, %c0_i32_0 : i32, i32, i32
  }
  func.func @transform_15(%arg0: i32) -> (i32, i32, i32) {
    %c0_i32 = arith.constant 0 : i32
    %c0_i32_0 = arith.constant 0 : i32
    %c0_i32_1 = arith.constant 0 : i32
    return %arg0, %c0_i32, %c0_i32_0 : i32, i32, i32
  }
  func.func @transform_16(%arg0: i32) -> (i32, i32, i32) {
    %c0_i32 = arith.constant 0 : i32
    %c0_i32_0 = arith.constant 0 : i32
    %c0_i32_1 = arith.constant 0 : i32
    return %arg0, %c0_i32, %c0_i32_0 : i32, i32, i32
  }
  func.func @transform_17(%arg0: i32) -> (i32, i32, i32) {
    %c0_i32 = arith.constant 0 : i32
    %c0_i32_0 = arith.constant 0 : i32
    %c0_i32_1 = arith.constant 0 : i32
    return %arg0, %c0_i32, %c0_i32_0 : i32, i32, i32
  }
  func.func @transform_18(%arg0: i32) -> (i32, i32, i32) {
    %c0_i32 = arith.constant 0 : i32
    %c0_i32_0 = arith.constant 0 : i32
    %c0_i32_1 = arith.constant 0 : i32
    return %arg0, %c0_i32, %c0_i32_0 : i32, i32, i32
  }
  func.func @transform_19(%arg0: i32) -> (i32, i32) {
    %c0_i32 = arith.constant 0 : i32
    %c0_i32_0 = arith.constant 0 : i32
    %c0_i32_1 = arith.constant 0 : i32
    return %c0_i32, %c0_i32_0 : i32, i32
  }
}

</mosaic_0001>

<bundles_post_ra>
// kernel: tile.13
= control target key start
LH: loop header
LB: loop body
LE: loop exit
PB: predicated region body
PF: predicated region fallthrough
CT: control target
= control target key end

     0   :  { %s22_s0 = inlined_call_operand.vmem [shape: f32[4], index: 0, kind: input, shape index: {}]   ;;  %s23_s1 = inlined_call_operand.vmem [shape: f32[2,4], index: 1, kind: output, shape index: {}]  }
   0x1   :  { %v4_v0 = vld [vmem:[%s22_s0] ss:$0 sm:$0xff] }
   0x2   :  { %5 = vst [vmem:[%s23_s1] sm:$0x3] %v4_v0 }

// kernel: tile.0
= control target key start
LH: loop header
LB: loop body
LE: loop exit
PB: predicated region body
PF: predicated region fallthrough
CT: control target
= control target key end

     0   :  { %s34_s8 = smov 125   ;;  %vm7_vm0 = vcmask 7168   ;;  %s35_s11 = smov 126   ;;  %s61_s0 = inlined_call_operand.vmem [shape: f32[2,4], index: 0, kind: input, shape index: {}]   ;;  %s62_s1 = inlined_call_operand.vmem [shape: f32[8,1], index: 1, kind: output, shape index: {}]  }
   0x1   :  { %v4_v0 = vld [vmem:[%s61_s0] sm:$0x3]  ;;  %s33_s0 = smov 127  }
   0x2   :  { %5 = vst [vmem:[#allocation0] sm:$0x3] %v4_v0 }
   0x9   :  { %v9_v1 = vld [vmem:[#allocation0] sm:$0x3]  }
   0xa   :  { %v21_v2 = vld [vmem:[#allocation0] sm:$0x3]   ;;  %10 = vrot.lane.b32.xlu0 %v9_v1, %s33_s0 }
   0xb   :  { %22 = vrot.lane.b32.xlu1 %v21_v2, %s34_s8  ;;  %v6_v3 = vld [vmem:[#allocation0] sm:$0x3]  }
   0xc   :  { %v15_v4 = vld [vmem:[#allocation0] sm:$0x3]   ;;  %8 = vst.msk [vmem:[%s62_s1] ss:$4 sm:$0x3] %vm7_vm0, %v6_v3  }
   0xe   :  { %16 = vrot.lane.b32.xlu0 %v15_v4, %s35_s11 }
  0x7c   :  { %v11_v5 = vpop.permute.xlu0 %10  }
  0x7d   :  { %v23_v6 = vpop.permute.xlu1 %22   ;;  %27 = vst.msk [vmem:[%s62_s1 + $0x1] ss:$4 sm:$0x3] %vm7_vm0, %v11_v5  }
  0x7e   :  { %29 = vst.msk [vmem:[%s62_s1 + $0x3] ss:$4 sm:$0x3] %vm7_vm0, %v23_v6  }
  0x80   :  { %v17_v7 = vpop.permute.xlu0 %16  }
  0x81   :  { %28 = vst.msk [vmem:[%s62_s1 + $0x2] ss:$4 sm:$0x3] %vm7_vm0, %v17_v7  }

// kernel: block_forward.1
= control target key start
LH: loop header
LB: loop body
LE: loop exit
PB: predicated region body
PF: predicated region fallthrough
CT: control target
= control target key end

     0   :  { %s4899_s0 = inlined_call_operand.vmem [shape: f32[8,16], index: 0, kind: input, shape index: {}]   ;;  %s4900_s1 = inlined_call_operand.vmem [shape: bf16[3,8,8], index: 1, kind: input, shape index: {}]   ;;  %s4901_s2 = inlined_call_operand.vmem [shape: bf16[3,16,16], index: 2, kind: input, shape index: {}]   ;;  %s4902_s3 = inlined_call_operand.vmem [shape: f32[8,1], index: 3, kind: input, shape index: {}]   ;;  %s4903_s4 = inlined_call_operand.vmem [shape: f32[8,1], index: 4, kind: input, shape index: {}]   ;;  %s4904_s5 = inlined_call_operand.vmem [shape: bf16[16,2], index: 5, kind: input, shape index: {}]   ;;  %s4905_s6 = inlined_call_operand.vmem [shape: bf16[2,16], index: 6, kind: input, shape index: {}]   ;;  %s4906_s7 = inlined_call_operand.vmem [shape: bf16[2,16,48], index: 7, kind: input, shape index: {}]   ;;  %s4907_s8 = inlined_call_operand.vmem [shape: f32[2,1,48], index: 8, kind: input, shape index: {}]   ;;  %s4908_s9 = inlined_call_operand.vmem [shape: bf16[2,16,16], index: 9, kind: input, shape index: {}]   ;;  %s4909_s10 = inlined_call_operand.vmem [shape: f32[2,1,16], index: 10, kind: input, shape index: {}]   ;;  %s4910_s11 = inlined_call_operand.vmem [shape: bf16[2,16,2048], index: 11, kind: input, shape index: {}]   ;;  %s4911_s12 = inlined_call_operand.vmem [shape: f32[2,1,2048], index: 12, kind: input, shape index: {}]   ;;  %s4912_s13 = inlined_call_operand.vmem [shape: bf16[2,2048,16], index: 13, kind: input, shape index: {}]   ;;  %s4913_s14 = inlined_call_operand.vmem [shape: f32[2,1,16], index: 14, kind: input, shape index: {}]   ;;  %s4914_s15 = inlined_call_operand.vmem [shape: f32[2,1,16], index: 15, kind: input, shape index: {}]   ;;  %s4915_s16 = inlined_call_operand.vmem [shape: f32[2,1,16], index: 16, kind: input, shape index: {}]   ;;  %s4916_s17 = inlined_call_operand.vmem [shape: f32[2,1,16], index: 17, kind: input, shape index: {}]   ;;  %s4917_s18 = inlined_call_operand.vmem [shape: f32[2,1,16], index: 18, kind: input, shape index: {}]   ;;  %s4918_s19 = inlined_call_operand.hbm [shape: f32[8,16], index: 19, kind: output, shape index: {}]  }
   0x1   :  { %4924 = sst [smem:[#allocation8_spill]] %s4899_s0 }
   0x2   :  { %4925 = sst [smem:[#allocation9_spill]] %s4900_s1 }
   0x3   :  { %4926 = sst [smem:[#allocation10_spill]] %s4901_s2 }
   0x4   :  { %4927 = sst [smem:[#allocation11_spill]] %s4902_s3 }
   0x5   :  { %4928 = sst [smem:[#allocation12_spill]] %s4904_s5 }
   0x6   :  { %4929 = sst [smem:[#allocation13_spill]] %s4905_s6 }
   0x7   :  { %4930 = sst [smem:[#allocation14_spill]] %s4906_s7 }
   0x8   :  { %4931 = sst [smem:[#allocation15_spill]] %s4908_s9 }
   0x9   :  { %4932 = sst [smem:[#allocation16_spill]] %s4910_s11 }
   0xa   :  { %4933 = sst [smem:[#allocation17_spill]] %s4911_s12 }
   0xb   :  { %4934 = sst [smem:[#allocation18_spill]] %s4918_s19 }
   0xc   :  { %24 = vsyncpa [#allocation4], 0  ;;  %s4437_s0 = smov 0  }
   0xd LB: > { %4935 = sst [smem:[#allocation6_spill]] %s4326_s0  ;;  %s4443_s30 = sadd.s32 4294967295, %s4326_s0   ;;  %s4326_s0 = sphi %s4437_s0, %s30_s0  }
   0xe   : > { %p3621_p0 = scmp.ge.s32.totalorder %s4326_s0, 1  ;;  %p628_p1 = scmp.lt.s32.totalorder %s4326_s0, 3 }
  0x10   : > { %p629_p2 = pnand %p3621_p0, %p628_p1 }
  0x12   : > { %632 = sbr.rel (%p629_p2) target bundleno = 3099 (0xc1b), region = 96 }
  0x19   : > { %p719_p3 = scmp.lt.s32.totalorder %s4443_s30, 1  ;;  %s4936_s7 = sld [smem:[#allocation14_spill]] }
  0x1a   : > { %s4937_s9 = sld [smem:[#allocation15_spill]]  ;;  %s4938_s11 = sld [smem:[#allocation16_spill]] }
  0x1b   : > { %s4449_s20 = scalar_select %p719_p3, %s4443_s30, 1 }
  0x1c   : > { %s4939_s12 = sld [smem:[#allocation17_spill]]  ;;  %p3631_p4 = scmp.ne.s32.totalorder %s4443_s30, 0 }
  0x1d   : > { %s3821_s21 = sshll.u32 %s4449_s20, 3  ;;  %s3823_s19 = sshll.u32 %s4449_s20, 7  ;;  %v4328_v1 = vmov (!%p3631_p4), 0.0   ;;  %vm779_vm0 = vcmask (!%p3631_p4), 130048   ;;  %vm4329_vm1 = vmmov (!%p3631_p4), 0   ;;  %vm881_vm2 = vcmask (!%p3631_p4), 1043456  }
  0x1e   : > { %s3628_s22 = sshll.u32 %s4449_s20, 4  ;;  %s751_s0 = scalar_lea.vmem %s4913_s14, %s4449_s20  ;;  %4027 = vmatprep.subr.bf16.mxu1 (!%p3631_p4), %v4328_v1  ;;  %4039 = vmatprep.subr.bf16.mxu0 (!%p3631_p4), %v4328_v1  ;;  %vm877_vm3 = vcmask (!%p3631_p4), 64512   ;;  %v4330_v35 = vmov (!%p3631_p4), 0   ;;  %v1094_v36 = vld [vmem:[%s4903_s4] sm:$0xff] (!%p3631_p4) }
  0x1f   : > { %s4459_s25 = scalar_lea.vmem %s4936_s7, %s3821_s21  ;;  %s3824_s7 = sshll.u32 %s4449_s20, 10  ;;  %4029 = vmatprep.mubr.msk.bf16.mxu1 (!%p3631_p4), %vm4329_vm1, %v4328_v1  ;;  %4041 = vmatprep.mubr.msk.bf16.mxu0 (!%p3631_p4), %vm4329_vm1, %v4328_v1 }
  0x20   : > { %s4464_s27 = scalar_lea.vmem %s4937_s9, %s3821_s21  ;;  %s4474_s1 = scalar_lea.vmem %s4938_s11, %s3823_s19  ;;  %4136 = vset.pattern.permute.xlu1 (!%p3631_p4), %v4330_v35  ;;  %4137 = vset.pattern.permute.xlu0 (!%p3631_p4), %v4330_v35 }
  0x21   : > { %s4486_s26 = scalar_lea.vmem %s4912_s13, %s3824_s7  ;;  %s754_s6 = scalar_lea.vmem %s4914_s15, %s4449_s20 }
  0x22   : > { %s4480_s24 = scalar_lea.vmem %s4939_s12, %s3628_s22  ;;  %s757_s2 = scalar_lea.vmem %s4915_s16, %s4449_s20 }
  0x23   : > { %4940 = sst [smem:[#allocation7_spill]] %s4480_s24  ;;  %s760_s12 = scalar_lea.vmem %s4916_s17, %s4449_s20 }
  0x24   : > { %s763_s7 = scalar_lea.vmem %s4917_s18, %s4449_s20  ;;  %768 = sbr.rel (%p3631_p4) target bundleno = 879 (0x36f), region = 100 }
  0x25   : > { %s4941_s29 = sld [smem:[#allocation10_spill]] (!%p3631_p4)  ;;  %s4942_s5 = sld [smem:[#allocation8_spill]] (!%p3631_p4) }
  0x26   : > { %s4943_s28 = sld [smem:[#allocation9_spill]] (!%p3631_p4)  ;;  %s4944_s23 = sld [smem:[#allocation11_spill]] (!%p3631_p4) }
  0x2b   : > { %v4138_v0 = vld [vmem:[%s4941_s29] sm:$0xff]   ;;  %v4139_v3 = vld [vmem:[%s4941_s29 + $0x8] sm:$0xff]   ;;  %v4140_v5 = vld [vmem:[%s4941_s29 + $0x10] sm:$0xff]  }
  0x2c   : > { %v769_v2 = vld [vmem:[%s4942_s5] sm:$0xff]  ;;  %4028 = vmatpush3.bf16.msra.mxu1 %v4138_v0  ;;  %v3645_v26 = vld [vmem:[%s4943_s28 + $0x8] sm:$0xf] }
  0x2d   : > { %v770_v4 = vpack.c.bf16 %v769_v2, %v769_v2  ;;  %4033 = vmatprep.subr.bf16.mxu1 %v4328_v1  ;;  %v3638_v17 = vld [vmem:[%s4943_s28 + $0x4] sm:$0xf]  ;;  %v823_v24 = vld [vmem:[%s4943_s28] sm:$0xf] }
  0x2e   : > { %v1087_v34 = vld [vmem:[%s4944_s23] sm:$0xff] }
  0x2f   : > { %4030 = vmatmul.mubr.msk.bf16.vlgmr.msra.gmra.mrb[0].mxu1 %vm779_vm0, %v770_v4  ;;  %1090 = vperm.xlu1 %4136, %v1087_v34  }
  0x30   : > { %4034 = vmatpush3.bf16.msra.mxu1 %v4139_v3  ;;  %4035 = vmatprep.mubr.msk.bf16.mxu1 %vm4329_vm1, %v4328_v1 }
  0x31   : > { %4051 = vmatprep.subr.bf16.mxu1 %v4328_v1 }
  0x33   : > { %1097 = vperm.xlu1 %4136, %v1094_v36  }
  0x37   : > { %4036 = vmatmul.mubr.msk.bf16.vlgmr.msra.gmra.mrb[4].mxu1 %vm779_vm0, %v770_v4 }
  0x38   : > { %4052 = vmatpush3.bf16.msra.mxu1 %v4140_v5  ;;  %4053 = vmatprep.mubr.msk.bf16.mxu1 %vm4329_vm1, %v4328_v1 }
  0x3f   : > { %4054 = vmatmul.mubr.msk.bf16.vlgmr.msra.gmra.mrb[8].mxu1 %vm779_vm0, %v770_v4 }
  0xae   : > { %v1091_v47 = vpop.permute.xlu1 %1090 }
  0xb2   : > { %v1098_v51 = vpop.permute.xlu1 %1097 }
 0x102   : > { %v817_v6 = vpop.f32.mrb[0].mxu1 }
 0x103   : > { %v4031_v7 = vpop.f32.mrb[1].mxu1  ;;  %v824_v14 = vpack.c.bf16 %v817_v6, %v817_v6 }
 0x104   : > { %v820_v8 = vpop.f32.mrb[2].mxu1 }
 0x105   : > { %v4032_v9 = vpop.f32.mrb[3].mxu1  ;;  %v929_v18 = vsel %vm881_vm2, %v824_v14, 0 }
 0x10a   : > { %v868_v10 = vpop.f32.mrb[4].mxu1 }
 0x10b   : > { %v876_v11 = vpack.c.bf16 %v868_v10, %v868_v10  ;;  %v4037_v12 = vpop.f32.mrb[5].mxu1 }
 0x10c   : > { %v871_v13 = vpop.f32.mrb[6].mxu1 }
 0x10d   : > { %v4038_v15 = vpop.f32.mrb[7].mxu1  ;;  %v883_v16 = vsel %vm881_vm2, %v876_v11, 0 }
 0x10e   : > { %4040 = vmatpush3.bf16.msra.mxu0 %v883_v16 }
 0x10f   : > { %4045 = vmatprep.subr.bf16.mxu0 %v4328_v1 }
 0x111   : > { %4042 = vmatmul.mubr.msk.bf16.vlgmr.msra.gmra.mrb[0].mxu0 %vm877_vm3, %v3638_v17 }
 0x112   : > { %4046 = vmatpush3.bf16.msra.mxu0 %v929_v18  ;;  %v1014_v19 = vpop.f32.mrb[8].mxu1  ;;  %4047 = vmatprep.mubr.msk.bf16.mxu0 %vm4329_vm1, %v4328_v1 }
 0x113   : > { %v4055_v20 = vpop.f32.mrb[9].mxu1  ;;  %4057 = vmatprep.subr.bf16.mxu0 %v4328_v1  ;;  %v1022_v23 = vpack.c.bf16 %v1014_v19, %v1014_v19 }
 0x114   : > { %v1017_v21 = vpop.f32.mrb[10].mxu1 }
 0x115   : > { %v4056_v22 = vpop.f32.mrb[11].mxu1  ;;  %v1027_v25 = vsel %vm881_vm2, %v1022_v23, 0 }
 0x11d   : > { %4048 = vmatmul.mubr.msk.bf16.vlgmr.msra.gmra.mrb[0].mxu0 %vm877_vm3, %v823_v24 }
 0x11e   : > { %4058 = vmatpush3.bf16.msra.mxu0 %v1027_v25  ;;  %4059 = vmatprep.mubr.msk.bf16.mxu0 %vm4329_vm1, %v4328_v1 }
 0x129   : > { %4060 = vmatmul.mubr.msk.bf16.vlgmr.msra.gmra.mrb[0].mxu0 %vm877_vm3, %v3645_v26 }
 0x1fc   : > { %v1063_v27 = vpop.f32.mrb[0].mxu0 }
 0x1fd   : > { %v1070_v28 = vrot.slane %v1063_v27, 4  ;;  %v4061_v29 = vpop.f32.mrb[1].mxu0 }
 0x1fe   : > { %v1066_v30 = vpop.f32.mrb[2].mxu0 }
 0x1ff   : > { %v4062_v31 = vpop.f32.mrb[3].mxu0  ;;  %v1071_v32 = vadd.f32 %v1070_v28, %v1063_v27 }
 0x201   : > { %v1072_v33 = vsel %vm779_vm0, %v1071_v32, 0.0 }
 0x202   : > { %1073 = vadd.xlane.f32.xlu0 %v1072_v33 }
 0x28f   : > { %v1074_v37 = vpop.xlane.xlu0 %1073 }
 0x290   : > { %v1075_v38 = vmul.f32 0.03125, %v1074_v37 }
 0x292   : > { %v1076_v39 = vsub.f32 %v1063_v27, %v1075_v38 }
 0x294   : > { %v1077_v40 = vmul.f32 %v1076_v39, %v1076_v39 }
 0x296   : > { %v1078_v41 = vrot.slane %v1077_v40, 4 }
 0x298   : > { %v1079_v42 = vadd.f32 %v1078_v41, %v1077_v40 }
 0x29a   : > { %v1080_v43 = vsel %vm779_vm0, %v1079_v42, 0.0 }
 0x29b   : > { %1081 = vadd.xlane.f32.xlu0 %v1080_v43 }
 0x328   : > { %v1082_v44 = vpop.xlane.xlu0 %1081 }
 0x329   : > { %v1083_v45 = vmul.f32 0.03125, %v1082_v44 }
 0x32b   : > { %v1084_v46 = vadd.f32 1e-05, %v1083_v45 }
 0x32d   : > { %4141 = vrsqrt.f32 %v1084_v46 }
 0x337   : > { %v4142_v48 = vpop.eup %4141 }
 0x338   : > { %v1086_v49 = vmul.f32 %v4142_v48, %v1076_v39 }
 0x33a   : > { %v1093_v50 = vmul.f32 %v1091_v47, %v1086_v49 }
 0x33c   : > { %v1100_v52 = vadd.f32 %v1098_v51, %v1093_v50 }
 0x33e   : > { %v1102_v53 = vand.u32 2147483647, %v1100_v52  ;;  %v1101_v0 = vmax.f32 %v1100_v52, 0.0 }
 0x340   : > { %v1103_v54 = vsub.f32 0.0, %v1102_v53 }
 0x342   : > { %v1104_v55 = vmul.f32 1.442695, %v1103_v54 }
 0x344   : > { %4143 = vpow2.f32 %v1104_v55 }
 0x34e   : > { %v4144_v56 = vpop.eup %4143 }
 0x34f   : > { %v1106_v57 = vadd.f32 1.0, %v4144_v56  ;;  %v1109_v58 = vmul.f32 -0.5, %v4144_v56  ;;  %v1112_v60 = vand.u32 2147483647, %v4144_v56 }
 0x351   : > { %4145 = vlog2.f32 %v1106_v57  ;;  %v1110_v59 = vadd.f32 1.0, %v1109_v58  ;;  %vm1113_vm4 = vcmp.lt.f32.partialorder %v1112_v60, 0.0004427343 }
 0x353   : > { %v1111_v63 = vmul.f32 %v4144_v56, %v1110_v59 }
 0x35b   : > { %v4146_v61 = vpop.eup %4145 }
 0x35c   : > { %v1108_v62 = vmul.f32 0.6931472, %v4146_v61 }
 0x35e   : > { %v1114_v1 = vsel %vm1113_vm4, %v1111_v63, %v1108_v62 }
 0x35f   : > { %v1115_v2 = vadd.f32 %v1114_v1, %v1101_v0 }
 0x361   : > { %4147 = vtanh.f32 %v1115_v2 }
 0x36b   : > { %v4148_v3 = vpop.eup %4147 }
 0x36c   : > { %v1117_v4 = vmul.f32 %v4148_v3, %v1100_v52 }
 0x36e   : > { %1118 = vst.msk [vmem:[#allocation2] sm:$0xff] %vm779_vm0, %v1117_v4 }
 0x36f PF: > { %v4149_v5 = vld [vmem:[%s4459_s25] sm:$0xff]   ;;  %v4331_v6 = vmov 0.0   ;;  %vm1139_vm5 = vcmask 130048   ;;  %vm4332_vm6 = vmmov 0   ;;  %s4945_s11 = sld [smem:[#allocation12_spill]]  ;;  %s4946_s22 = scalar_lea.vmem %s4907_s8, %s4449_s20  ;;  %vm1301_vm7 = vcmask 1040384  }
 0x370   : > { %4063 = vmatprep.subr.bf16.mxu0 %v4331_v6  ;;  %4069 = vmatprep.subr.bf16.mxu1 %v4331_v6  ;;  %v3647_v10 = vld [vmem:[%s4946_s22] ss:$0 sm:$0xff]  ;;  %s4333_s24 = smov 112   ;;  %s4334_s23 = smov 96   ;;  %vm1297_vm8 = vcmask 15360  }
 0x371   : > { %4064 = vmatpush3.bf16.msra.mxu0 %v4149_v5  ;;  %4065 = vmatprep.mubr.msk.bf16.mxu0 %vm4332_vm6, %v4331_v6  ;;  %s4947_s25 = sld [smem:[#allocation13_spill]]  ;;  %v4151_v44 = vld [vmem:[%s4464_s27] sm:$0xff]   ;;  %p3816_p5 = scmp.ne.s32.totalorder %s4443_s30, 1 }
 0x372   : > { %4075 = vmatprep.subr.bf16.mxu0 %v4331_v6  ;;  %4071 = vmatprep.mubr.msk.bf16.mxu1 %vm4332_vm6, %v4331_v6  ;;  %s4950_s27 = sld [smem:[#allocation8_spill]] (!%p3816_p5) }
 0x375   : > { %v4556_v7 = vld [vmem:[#allocation2] sm:$0xff] }
 0x376   : > { %v1123_v8 = vpack.c.bf16 %v4556_v7, %v4556_v7  ;;  %v4150_v9 = vld [vmem:[%s4945_s11] sm:$0xff]   ;;  %s4948_s11 = scalar_lea.vmem %s4909_s10, %s4449_s20 }
 0x377   : > { %4070 = vmatpush3.bf16.msra.mxu1 %v4150_v9  ;;  %v1122_v22 = vld [vmem:[%s4947_s25] sm:$0x1] }
 0x378   : > { %4066 = vmatmul.mubr.msk.bf16.vlgmr.msra.gmra.mrb[0].mxu0 %vm1139_vm5, %v1123_v8  ;;  %4081 = vmatprep.subr.bf16.mxu1 %v4331_v6  ;;  %v1303_v23 = vsel %vm1301_vm7, %v1122_v22, 0  ;;  %v3656_v0 = vld [vmem:[%s4948_s11] ss:$0 sm:$0xff]  ;;  %v1531_v22 = vld [vmem:[%s4474_s1 + $0x10] sm:$0xff] }
 0x379   : > { %4077 = vmatprep.mubr.msk.bf16.mxu0 %vm4332_vm6, %v4331_v6  ;;  %4076 = vmatpush3.bf16.msra.mxu0 %v4150_v9 }
 0x37a   : > { %4087 = vmatprep.subr.bf16.mxu0 %v4331_v6 }
 0x44b   : > { %v1177_v11 = vpop.f32.mrb[0].mxu0 }
 0x44c   : > { %v1178_v12 = vadd.f32 %v3647_v10, %v1177_v11  ;;  %v4067_v13 = vpop.f32.mrb[1].mxu0 }
 0x44d   : > { %v1180_v14 = vpop.f32.mrb[2].mxu0 }
 0x44e   : > { %1184 = vrot.lane.b32.xlu0 %v1178_v12, %s4333_s24  ;;  %v4068_v15 = vpop.f32.mrb[3].mxu0  ;;  %v1529_v14 = vld [vmem:[%s4474_s1] sm:$0xff] }
 0x44f   : > { %v1537_v15 = vld [vmem:[%s4474_s1 + $0x40] sm:$0xff] }
 0x452   : > { %1239 = vrot.lane.b32.xlu0 %v1178_v12, %s4334_s23 }
 0x4c0   : > { %v1185_v16 = vpop.permute.xlu0 %1184 }
 0x4c1   : > { %v1187_v17 = vmul.f32 %v1185_v16, %v1178_v12  ;;  %v1238_v18 = vrot.slane %v1185_v16, 4  ;;  %v1530_v16 = vld [vmem:[%s4474_s1 + $0x8] sm:$0xff] }
 0x4c3   : > { %v1188_v19 = vpack.c.bf16 %v1187_v17, %v1187_v17  ;;  %v1243_v20 = vmul.f32 %v1238_v18, %v1178_v12  ;;  %v3662_v17 = vcombine.high %v1529_v14, %v1537_v15  ;;  %v1538_v18 = vld [vmem:[%s4474_s1 + $0x48] sm:$0xff] }
 0x4c4   : > { %v1240_v45 = vpop.permute.xlu0 %1239 }
 0x4c5   : > { %v1244_v21 = vpack.c.bf16 %v1243_v20, %v1243_v20  ;;  %4072 = vmatmul.mubr.msk.bf16.vlgmr.msra.gmra.mrb[0].mxu1 %vm1139_vm5, %v1188_v19  ;;  %v1242_v46 = vrot.slane %v1240_v45, 4  ;;  %v3663_v19 = vcombine.low %v1530_v16, %v1538_v18  ;;  %v3664_v20 = vcombine.high %v1530_v16, %v1538_v18  ;;  %v4175_v16 = vld [vmem:[%s4486_s26 + $0xa8] sm:$0xff]   ;;  %v4177_v18 = vld [vmem:[%s4486_s26 + $0xf0] sm:$0xff]  }
 0x4c6   : > { %4083 = vmatprep.mubr.msk.bf16.mxu1 %vm4332_vm6, %v4331_v6  ;;  %4082 = vmatpush3.bf16.msra.mxu1 %v1303_v23 }
 0x4c7   : > { %4078 = vmatmul.mubr.msk.bf16.vlgmr.msra.gmra.mrb[4].mxu0 %vm1139_vm5, %v1244_v21  ;;  %4093 = vmatprep.subr.bf16.mxu1 %v4331_v6  ;;  %v4335_v21 = vmov 0  }
 0x4c8   : > { %4089 = vmatprep.mubr.msk.bf16.mxu0 %vm4332_vm6, %v4331_v6  ;;  %4088 = vmatpush3.bf16.msra.mxu0 %v1303_v23 }
 0x4c9   : > { %4099 = vmatprep.subr.bf16.mxu0 %v4331_v6 }
 0x598   : > { %v1232_v24 = vpop.f32.mrb[0].mxu1 }
 0x599   : > { %v4073_v25 = vpop.f32.mrb[1].mxu1 }
 0x59a   : > { %v1235_v26 = vpop.f32.mrb[2].mxu1  ;;  %v1282_v27 = vpop.f32.mrb[4].mxu0 }
 0x59b   : > { %v1288_v28 = vmax.f32 %v1232_v24, %v1282_v27  ;;  %v4074_v29 = vpop.f32.mrb[3].mxu1  ;;  %v4079_v30 = vpop.f32.mrb[5].mxu0 }
 0x59c   : > { %v1285_v31 = vpop.f32.mrb[6].mxu0 }
 0x59d   : > { %v1289_v32 = vsub.f32 %v1232_v24, %v1288_v28  ;;  %v1292_v33 = vsub.f32 %v1282_v27, %v1288_v28  ;;  %v4080_v34 = vpop.f32.mrb[7].mxu0  ;;  %v1532_v24 = vld [vmem:[%s4474_s1 + $0x18] sm:$0xff] }
 0x59e   : > { %v1540_v27 = vld [vmem:[%s4474_s1 + $0x58] sm:$0xff]  ;;  %v3659_v34 = vld [vmem:[%s754_s6] ss:$0 sm:$0xff] }
 0x59f   : > { %v1290_v35 = vmul.f32 1.442695, %v1289_v32  ;;  %v1293_v36 = vmul.f32 1.442695, %v1292_v33  ;;  %v3667_v28 = vcombine.low %v1532_v24, %v1540_v27  ;;  %v3668_v29 = vcombine.high %v1532_v24, %v1540_v27  ;;  %v4184_v24 = vld [vmem:[%s4486_s26 + $0x140] sm:$0xff]  }
 0x5a1   : > { %4280 = vpow2.f32 %v1290_v35 }
 0x5a2   : > { %4282 = vpow2.f32 %v1293_v36  ;;  %v3660_v36 = vld [vmem:[%s757_s2] ss:$0 sm:$0xff] }
 0x5ab   : > { %v4281_v37 = vpop.eup %4280 }
 0x5ac   : > { %v4283_v38 = vpop.eup %4282  ;;  %v1296_v39 = vpack.c.bf16 %v4281_v37, %v4281_v37 }
 0x5ad   : > { %v1295_v40 = vadd.f32 %v4283_v38, %v4281_v37  ;;  %v1346_v41 = vpack.c.bf16 %v4283_v38, %v4283_v38  ;;  %v1533_v38 = vld [vmem:[%s4474_s1 + $0x20] sm:$0xff] }
 0x5ae   : > { %4084 = vmatmul.mubr.msk.bf16.vlgmr.msra.gmra.mrb[4].mxu1 %vm1297_vm8, %v1296_v39 }
 0x5af   : > { %4284 = vrcp.f32 %v1295_v40  ;;  %4090 = vmatmul.mubr.msk.bf16.vlgmr.msra.gmra.mrb[8].mxu0 %vm1297_vm8, %v1346_v41  ;;  %4094 = vmatpush3.bf16.msra.mxu1 %v1303_v23  ;;  %v1539_v23 = vld [vmem:[%s4474_s1 + $0x50] sm:$0xff]  ;;  %v1541_v40 = vld [vmem:[%s4474_s1 + $0x60] sm:$0xff]  ;;  %v1534_v41 = vld [vmem:[%s4474_s1 + $0x28] sm:$0xff] }
 0x5b0   : > { %4095 = vmatprep.mubr.msk.bf16.mxu1 %vm4332_vm6, %v4331_v6  ;;  %4101 = vmatprep.mubr.msk.bf16.mxu0 %vm4332_vm6, %v4331_v6  ;;  %v3665_v25 = vcombine.low %v1531_v22, %v1539_v23  ;;  %v3666_v26 = vcombine.high %v1531_v22, %v1539_v23  ;;  %v4182_v22 = vld [vmem:[%s4486_s26 + $0x38] sm:$0xff]  }
 0x5b1   : > { %4100 = vmatpush3.bf16.msra.mxu0 %v4151_v44  ;;  %1712 = vmatprep.subr.bf16.mxu1 %v3662_v17  ;;  %v3670_v44 = vcombine.high %v1533_v38, %v1541_v40  ;;  %v4176_v17 = vld [vmem:[%s4486_s26 + $0x70] sm:$0xff]   ;;  %v4183_v23 = vld [vmem:[%s4486_s26 + $0xb8] sm:$0xff]  }
 0x5b2   : > { %1753 = vmatprep.subr.bf16.mxu0 %v3664_v20  ;;  %v4180_v20 = vld [vmem:[%s4486_s26 + $0x78] sm:$0xff]  }
 0x5b9   : > { %v4285_v42 = vpop.eup %4284 }
 0x5ba   : > { %v1393_v43 = vpack.c.bf16 %v4285_v42, %v4285_v42  ;;  %v1542_v42 = vld [vmem:[%s4474_s1 + $0x68] sm:$0xff] }
 0x5bc   : > { %4096 = vmatmul.mubr.msk.bf16.vlgmr.msra.gmra.mrb[8].mxu1 %vm1297_vm8, %v1393_v43 }
 0x5bd   : > { %1744 = vmatprep.mubr.bf16.mxu1 %v4335_v21 }
 0x681   : > { %v1339_v47 = vpop.f32.mrb[4].mxu1 }
 0x682   : > { %v1345_v48 = vmul.f32 %v1339_v47, %v1240_v45  ;;  %v1384_v49 = vpop.f32.mrb[8].mxu0  ;;  %v4085_v50 = vpop.f32.mrb[5].mxu1  ;;  %v3672_v45 = vcombine.high %v1534_v41, %v1542_v42  ;;  %v1543_v47 = vld [vmem:[%s4474_s1 + $0x70] sm:$0xff] }
 0x683   : > { %v1390_v51 = vmul.f32 %v1384_v49, %v1242_v46  ;;  %v4091_v52 = vpop.f32.mrb[9].mxu0  ;;  %v1342_v53 = vpop.f32.mrb[6].mxu1  ;;  %v1535_v46 = vld [vmem:[%s4474_s1 + $0x30] sm:$0xff]  ;;  %v1544_v49 = vld [vmem:[%s4474_s1 + $0x78] sm:$0xff]  ;;  %v3669_v50 = vcombine.low %v1533_v38, %v1541_v40 }
 0x684   : > { %v1387_v54 = vpop.f32.mrb[10].mxu0  ;;  %v4086_v55 = vpop.f32.mrb[7].mxu1  ;;  %v3674_v52 = vcombine.high %v1535_v46, %v1543_v47 }
 0x685   : > { %v4092_v56 = vpop.f32.mrb[11].mxu0  ;;  %v1391_v57 = vadd.f32 %v1390_v51, %v1345_v48  ;;  %v1536_v48 = vld [vmem:[%s4474_s1 + $0x38] sm:$0xff]  ;;  %v3671_v51 = vcombine.low %v1534_v41, %v1542_v42  ;;  %v3673_v54 = vcombine.low %v1535_v46, %v1543_v47  ;;  %s4949_s1 = sld [smem:[#allocation7_spill]] }
 0x686   : > { %v3676_v53 = vcombine.high %v1536_v48, %v1544_v49  ;;  %v3675_v55 = vcombine.low %v1536_v48, %v1544_v49  ;;  %v4152_v56 = vld [vmem:[%s4486_s26 + $0x40] sm:$0xff]  }
 0x68f   : > { %v1431_v58 = vpop.f32.mrb[8].mxu1 }
 0x690   : > { %v1437_v59 = vmul.f32 %v1431_v58, %v1391_v57  ;;  %v4097_v60 = vpop.f32.mrb[9].mxu1  ;;  %v4153_v57 = vld [vmem:[%s4486_s26 + $0xc0] sm:$0xff]  }
 0x691   : > { %v1434_v61 = vpop.f32.mrb[10].mxu1  ;;  %v4154_v58 = vld [vmem:[%s4486_s26] sm:$0xff]   ;;  %v4156_v60 = vld [vmem:[%s4486_s26 + $0x48] sm:$0xff]  }
 0x692   : > { %v1438_v62 = vpack.c.bf16 %v1437_v59, %v1437_v59  ;;  %v4098_v63 = vpop.f32.mrb[11].mxu1  ;;  %v4155_v59 = vld [vmem:[%s4486_s26 + $0x80] sm:$0xff]   ;;  %v4157_v61 = vld [vmem:[%s4486_s26 + $0xc8] sm:$0xff]  }
 0x693   : > { %v4159_v63 = vld [vmem:[%s4486_s26 + $0x88] sm:$0xff]  }
 0x694   : > { %4102 = vmatmul.mubr.msk.bf16.vlgmr.msra.gmra.mrb[12].mxu0 %vm1139_vm5, %v1438_v62  ;;  %v4158_v62 = vld [vmem:[%s4486_s26 + $0x8] sm:$0xff]  }
 0x695   : > { %1754 = vmatpush1.bf16.msra.mxu0 %v3663_v19  ;;  %1785 = vmatprep.mubr.bf16.mxu0 %v4335_v21  ;;  %v4179_v19 = vld [vmem:[%s4486_s26 + $0xb0] sm:$0xff]  }
 0x696   : > { %1835 = vmatprep.subr.bf16.mxu0 %v3668_v29  ;;  %v4680_v29 = vld [vmem:[%s4949_s1 + $0x8] sm:$0xff] }
 0x767   : > { %v1491_v1 = vpop.f32.mrb[12].mxu0 }
 0x768   : > { %v1492_v2 = vadd.f32 %v3656_v0, %v1491_v1  ;;  %v4103_v3 = vpop.f32.mrb[13].mxu0  ;;  %v4160_v0 = vld [vmem:[%s4486_s26 + $0x50] sm:$0xff]  }
 0x769   : > { %v1494_v4 = vpop.f32.mrb[14].mxu0  ;;  %v4161_v1 = vld [vmem:[%s4486_s26 + $0xd0] sm:$0xff]  }
 0x76a   : > { %v4104_v5 = vpop.f32.mrb[15].mxu0  ;;  %v1497_v6 = vadd.f32 %v1492_v2, %v4556_v7  ;;  %v3661_v7 = vcombine.low %v1529_v14, %v1537_v15  ;;  %v4162_v2 = vld [vmem:[%s4486_s26 + $0x10] sm:$0xff]   ;;  %v4164_v4 = vld [vmem:[%s4486_s26 + $0x58] sm:$0xff]   ;;  %v4173_v14 = vld [vmem:[%s4486_s26 + $0xe8] sm:$0xff]  }
 0x76b   : > { %v4163_v3 = vld [vmem:[%s4486_s26 + $0x90] sm:$0xff]   ;;  %v4165_v5 = vld [vmem:[%s4486_s26 + $0xd8] sm:$0xff]   ;;  %v4174_v15 = vld [vmem:[%s4486_s26 + $0x28] sm:$0xff]  }
 0x76c   : > { %v1500_v8 = vsel %vm1139_vm5, %v1497_v6, 0.0  ;;  %1713 = vmatpush1.bf16.msra.mxu1 %v3661_v7  ;;  %v4178_v7 = vld [vmem:[%s4486_s26 + $0x30] sm:$0xff]  }
 0x76d   : > { %1501 = vadd.xlane.f32.xlu1 %v1500_v8  ;;  %1794 = vmatprep.subr.bf16.mxu1 %v3666_v26  ;;  %v4167_v8 = vld [vmem:[%s4486_s26 + $0x98] sm:$0xff]   ;;  %v1549_v26 = vlaneseq }
 0x76f   : > { %v4676_v27 = vshrl.u32 %v1549_v26, 7  ;;  %v4195_v26 = vld [vmem:[%s4486_s26 + $0x190] sm:$0xff]  }
 0x7fa   : > { %v1502_v9 = vpop.xlane.xlu1 %1501 }
 0x7fb   : > { %v1504_v10 = vmul.f32 0.0625, %v1502_v9  ;;  %v4168_v9 = vld [vmem:[%s4486_s26 + $0x60] sm:$0xff]  }
 0x7fd   : > { %v1505_v11 = vsub.f32 %v1497_v6, %v1504_v10  ;;  %v4166_v6 = vld [vmem:[%s4486_s26 + $0x18] sm:$0xff]   ;;  %v4169_v10 = vld [vmem:[%s4486_s26 + $0xe0] sm:$0xff]  }
 0x7ff   : > { %v1506_v12 = vmul.f32 %v1505_v11, %v1505_v11 }
 0x801   : > { %v1507_v13 = vsel %vm1139_vm5, %v1506_v12, 0.0  ;;  %v4171_v12 = vld [vmem:[%s4486_s26 + $0xa0] sm:$0xff]  }
 0x802   : > { %1508 = vadd.xlane.f32.xlu1 %v1507_v13  ;;  %v4172_v13 = vld [vmem:[%s4486_s26 + $0x68] sm:$0xff]  }
 0x88f   : > { %v1509_v30 = vpop.xlane.xlu1 %1508 }
 0x890   : > { %v1510_v31 = vmul.f32 0.0625, %v1509_v30 }
 0x892   : > { %v1511_v32 = vadd.f32 1e-05, %v1510_v31  ;;  %v1551_v31 = vsub.s32 0, %v4676_v27 }
 0x894   : > { %4286 = vrsqrt.f32 %v1511_v32  ;;  %v1559_v32 = vsub.s32 2, %v4676_v27 }
 0x89e   : > { %v4287_v33 = vpop.eup %4286 }
 0x89f   : > { %v1513_v35 = vmul.f32 %v4287_v33, %v1505_v11  ;;  %v4170_v11 = vld [vmem:[%s4486_s26 + $0x20] sm:$0xff]  }
 0x8a0   : > { %v4690_v33 = vld [vmem:[%s4949_s1] sm:$0xff] }
 0x8a1   : > { %v1520_v37 = vmul.f32 %v3659_v34, %v1513_v35  ;;  %v1555_v34 = vsub.s32 1, %v4676_v27  ;;  %v1563_v35 = vsub.s32 3, %v4676_v27 }
 0x8a3   : > { %v4623_v39 = vadd.f32 %v3660_v36, %v1520_v37  ;;  %v1552_v36 = vrot.slane %v4690_v33, %v1551_v31  ;;  %v1560_v37 = vrot.slane %v4690_v33, %v1559_v32  ;;  %v1556_v38 = vrot.slane %v4690_v33, %v1555_v34 }
 0x8a4   : > { %v1564_v40 = vrot.slane %v4690_v33, %v1563_v35 }
 0x8a5   : > { %v1528_v43 = vpack.c.bf16 %v4623_v39, %v4623_v39 }
 0x8a7   : > { %3677 = vmatmul.mubr.msk.bf16.vlgmr.msra.gmra.mrb[12].mxu1 %vm1139_vm5, %v1528_v43  ;;  %3678 = vmatmul.mubr.msk.bf16.vlgmr.msra.gmra.mrb[16].mxu0 %vm1139_vm5, %v1528_v43 }
 0x8a8   : > { %1795 = vmatpush1.bf16.msra.mxu1 %v3665_v25  ;;  %1836 = vmatpush1.bf16.msra.mxu0 %v3667_v28  ;;  %v4185_v25 = vld [vmem:[%s4486_s26 + $0x1c0] sm:$0xff]   ;;  %v1575_v28 = vsub.s32 6, %v4676_v27 }
 0x8a9   : > { %1826 = vmatprep.mubr.bf16.mxu1 %v4335_v21  ;;  %1867 = vmatprep.mubr.bf16.mxu0 %v4335_v21 }
 0x8aa   : > { %1876 = vmatprep.subr.bf16.mxu1 %v3670_v44  ;;  %1917 = vmatprep.subr.bf16.mxu0 %v3672_v45  ;;  %v4685_v30 = vrot.slane %v4680_v29, %v1575_v28 }
 0x8af   : > { %3679 = vmatmul.mubr.msk.bf16.vlgmr.msra.gmra.mrb[16].mxu1 %vm1139_vm5, %v1528_v43  ;;  %3680 = vmatmul.mubr.msk.bf16.vlgmr.msra.gmra.mrb[20].mxu0 %vm1139_vm5, %v1528_v43 }
 0x8b0   : > { %1877 = vmatpush1.bf16.msra.mxu1 %v3669_v50  ;;  %1918 = vmatpush1.bf16.msra.mxu0 %v3671_v51  ;;  %v1571_v51 = vsub.s32 5, %v4676_v27 }
 0x8b1   : > { %1908 = vmatprep.mubr.bf16.mxu1 %v4335_v21  ;;  %1949 = vmatprep.mubr.bf16.mxu0 %v4335_v21 }
 0x8b2   : > { %1958 = vmatprep.subr.bf16.mxu1 %v3674_v52  ;;  %1999 = vmatprep.subr.bf16.mxu0 %v3676_v53  ;;  %v1579_v52 = vsub.s32 7, %v4676_v27 }
 0x8b7   : > { %3681 = vmatmul.mubr.msk.bf16.vlgmr.msra.gmra.mrb[20].mxu1 %vm1139_vm5, %v1528_v43  ;;  %3682 = vmatmul.mubr.msk.bf16.vlgmr.msra.gmra.mrb[24].mxu0 %vm1139_vm5, %v1528_v43 }
 0x8b8   : > { %1959 = vmatpush1.bf16.msra.mxu1 %v3673_v54  ;;  %2000 = vmatpush1.bf16.msra.mxu0 %v3675_v55 }
 0x8b9   : > { %1990 = vmatprep.mubr.bf16.mxu1 %v4335_v21  ;;  %2031 = vmatprep.mubr.bf16.mxu0 %v4335_v21  ;;  %v4181_v21 = vld [vmem:[%s4486_s26 + $0xf8] sm:$0xff]  }
 0x8ba   : > { %3851 = vmatprep.subr.bf16.mxu1 %v4152_v56  ;;  %3873 = vmatprep.subr.bf16.mxu0 %v4153_v57 }
 0x8bf   : > { %3683 = vmatmul.mubr.msk.bf16.vlgmr.msra.gmra.mrb[24].mxu1 %vm1139_vm5, %v1528_v43  ;;  %3684 = vmatmul.mubr.msk.bf16.vlgmr.msra.gmra.mrb[28].mxu0 %vm1139_vm5, %v1528_v43 }
 0x8c0   : > { %3852 = vmatpush3.bf16.msra.mxu1 %v4154_v58  ;;  %3874 = vmatpush3.bf16.msra.mxu0 %v4155_v59 }
 0x8c1   : > { %3853 = vmatprep.subr.bf16.mxu1 %v4156_v60  ;;  %3875 = vmatprep.subr.bf16.mxu0 %v4157_v61  ;;  %v1572_v61 = vrot.slane %v4690_v33, %v1571_v51 }
 0x8c4   : > { %3854 = vmatpush3.bf16.msra.mxu1 %v4158_v62  ;;  %3876 = vmatpush3.bf16.msra.mxu0 %v4159_v63  ;;  %v1580_v62 = vrot.slane %v4690_v33, %v1579_v52  ;;  %v4186_v63 = vld [vmem:[%s4486_s26 + $0x100] sm:$0xff]  }
 0x8c5   : > { %3855 = vmatprep.subr.bf16.mxu1 %v4160_v0  ;;  %3877 = vmatprep.subr.bf16.mxu0 %v4161_v1  ;;  %v4187_v0 = vld [vmem:[%s4486_s26 + $0x180] sm:$0xff]  }
 0x8c8   : > { %3856 = vmatpush3.bf16.msra.mxu1 %v4162_v2  ;;  %3878 = vmatpush3.bf16.msra.mxu0 %v4163_v3  ;;  %v4188_v3 = vld [vmem:[%s4486_s26 + $0x148] sm:$0xff]  }
 0x8c9   : > { %3857 = vmatprep.subr.bf16.mxu1 %v4164_v4  ;;  %3879 = vmatprep.subr.bf16.mxu0 %v4165_v5  ;;  %v4189_v4 = vld [vmem:[%s4486_s26 + $0x1c8] sm:$0xff]  }
 0x8cc   : > { %3858 = vmatpush3.bf16.msra.mxu1 %v4166_v6  ;;  %3880 = vmatpush3.bf16.msra.mxu0 %v4167_v8 }
 0x8cd   : > { %3859 = vmatprep.subr.bf16.mxu1 %v4168_v9  ;;  %3881 = vmatprep.subr.bf16.mxu0 %v4169_v10 }
 0x8d0   : > { %3860 = vmatpush3.bf16.msra.mxu1 %v4170_v11  ;;  %3882 = vmatpush3.bf16.msra.mxu0 %v4171_v12 }
 0x8d1   : > { %3861 = vmatprep.subr.bf16.mxu1 %v4172_v13  ;;  %3883 = vmatprep.subr.bf16.mxu0 %v4173_v14  ;;  %v4190_v14 = vld [vmem:[%s4486_s26 + $0x108] sm:$0xff]  }
 0x8d4   : > { %3862 = vmatpush3.bf16.msra.mxu1 %v4174_v15  ;;  %3884 = vmatpush3.bf16.msra.mxu0 %v4175_v16  ;;  %v4191_v15 = vld [vmem:[%s4486_s26 + $0x188] sm:$0xff]  }
 0x8d5   : > { %3863 = vmatprep.subr.bf16.mxu1 %v4176_v17  ;;  %3885 = vmatprep.subr.bf16.mxu0 %v4177_v18  ;;  %v4192_v18 = vld [vmem:[%s4486_s26 + $0x150] sm:$0xff]  }
 0x8d8   : > { %3864 = vmatpush3.bf16.msra.mxu1 %v4178_v7  ;;  %3886 = vmatpush3.bf16.msra.mxu0 %v4179_v19  ;;  %v4193_v7 = vld [vmem:[%s4486_s26 + $0x1d0] sm:$0xff]  }
 0x8d9   : > { %3865 = vmatprep.subr.bf16.mxu1 %v4180_v20  ;;  %3887 = vmatprep.subr.bf16.mxu0 %v4181_v21  ;;  %v1584_v21 = vrot.slane %v4680_v29, %v1551_v31 }
 0x8dc   : > { %3866 = vmatpush3.bf16.msra.mxu1 %v4182_v22  ;;  %3888 = vmatpush3.bf16.msra.mxu0 %v4183_v23  ;;  %v1592_v22 = vrot.slane %v4680_v29, %v1559_v32 }
 0x8dd   : > { %3895 = vmatprep.subr.bf16.mxu1 %v4184_v24  ;;  %3917 = vmatprep.subr.bf16.mxu0 %v4185_v25  ;;  %v4194_v25 = vld [vmem:[%s4486_s26 + $0x110] sm:$0xff]  }
 0x97a   : > { %v1746_v41 = vpop.f32.mrb[12].mxu1  ;;  %v1787_v42 = vpop.f32.mrb[16].mxu0 }
 0x97b   : > { %v1747_v43 = vadd.f32 %v1746_v41, %v1552_v36  ;;  %v1788_v44 = vadd.f32 %v1787_v42, %v1560_v37  ;;  %v1748_v45 = vpop.f32.mrb[13].mxu1  ;;  %v1789_v46 = vpop.f32.mrb[17].mxu0  ;;  %v4196_v36 = vld [vmem:[%s4486_s26 + $0x158] sm:$0xff]  }
 0x97c   : > { %v1749_v47 = vadd.f32 %v1748_v45, %v1556_v38  ;;  %v1790_v48 = vadd.f32 %v1789_v46, %v1564_v40  ;;  %v1750_v49 = vpop.f32.mrb[14].mxu1  ;;  %v1791_v50 = vpop.f32.mrb[18].mxu0  ;;  %v4197_v37 = vld [vmem:[%s4486_s26 + $0x1d8] sm:$0xff]  }
 0x97d   : > { %v2040_v53 = vmax.f32 %v1747_v43, 0.0  ;;  %v2042_v54 = vmax.f32 %v1788_v44, 0.0  ;;  %v1751_v55 = vpop.f32.mrb[15].mxu1  ;;  %v1792_v56 = vpop.f32.mrb[19].mxu0  ;;  %v4198_v45 = vld [vmem:[%s4486_s26 + $0x118] sm:$0xff]   ;;  %v4200_v50 = vld [vmem:[%s4486_s26 + $0x160] sm:$0xff]  }
 0x97e   : > { %v2041_v57 = vmax.f32 %v1749_v47, 0.0  ;;  %v2043_v58 = vmax.f32 %v1790_v48, 0.0  ;;  %v4199_v46 = vld [vmem:[%s4486_s26 + $0x198] sm:$0xff]   ;;  %v1567_v47 = vsub.s32 4, %v4676_v27  ;;  %v4202_v55 = vld [vmem:[%s4486_s26 + $0x120] sm:$0xff]  }
 0x97f   : > { %v2056_v1 = vpack.c.bf16 %v2040_v53, %v2040_v53  ;;  %v2058_v2 = vpack.c.bf16 %v2042_v54, %v2042_v54  ;;  %v4201_v53 = vld [vmem:[%s4486_s26 + $0x1e0] sm:$0xff]   ;;  %v4246_v27 = vld [vmem:[%s4486_s26 + $0x238] sm:$0xff]  }
 0x980   : > { %v2057_v59 = vpack.c.bf16 %v2041_v57, %v2041_v57  ;;  %v2059_v60 = vpack.c.bf16 %v2043_v58, %v2043_v58  ;;  %v1600_v54 = vrot.slane %v4680_v29, %v1567_v47  ;;  %v4203_v56 = vld [vmem:[%s4486_s26 + $0x1a0] sm:$0xff]   ;;  %v4204_v57 = vld [vmem:[%s4486_s26 + $0x168] sm:$0xff]  }
 0x981   : > { %v4205_v58 = vld [vmem:[%s4486_s26 + $0x1e8] sm:$0xff]  }
 0x982   : > { %v4714_v5 = vpop.f32.mrb[16].mxu1  ;;  %v4716_v6 = vpop.f32.mrb[20].mxu0  ;;  %3135 = vmatprep.mubr.bf16.mxu1 %v2057_v59  ;;  %3175 = vmatprep.mubr.bf16.mxu0 %v2059_v60 }
 0x983   : > { %v1830_v8 = vpop.f32.mrb[17].mxu1  ;;  %v1871_v9 = vpop.f32.mrb[21].mxu0  ;;  %3136 = vmatmul.mubr.bf16.vlgmr.msra.gmra.mrb[28].mxu1 %v2056_v1  ;;  %3176 = vmatmul.mubr.bf16.vlgmr.msra.gmra.mrb[32].mxu0 %v2058_v2 }
 0x984   : > { %v1831_v10 = vadd.f32 %v1830_v8, %v1572_v61  ;;  %v1872_v11 = vadd.f32 %v1871_v9, %v1580_v62  ;;  %3896 = vmatpush3.bf16.msra.mxu1 %v4186_v63  ;;  %3918 = vmatpush3.bf16.msra.mxu0 %v4187_v0  ;;  %v1832_v12 = vpop.f32.mrb[18].mxu1  ;;  %v1873_v13 = vpop.f32.mrb[22].mxu0  ;;  %v1568_v8 = vrot.slane %v4690_v33, %v1567_v47  ;;  %v4227_v47 = vld [vmem:[%s4486_s26 + $0x290] sm:$0xff]  }
 0x985   : > { %v1833_v16 = vpop.f32.mrb[19].mxu1  ;;  %v1874_v17 = vpop.f32.mrb[23].mxu0  ;;  %3897 = vmatprep.subr.bf16.mxu1 %v4188_v3  ;;  %3919 = vmatprep.subr.bf16.mxu0 %v4189_v4  ;;  %v4206_v3 = vld [vmem:[%s4486_s26 + $0x128] sm:$0xff]   ;;  %v4209_v12 = vld [vmem:[%s4486_s26 + $0x1f0] sm:$0xff]   ;;  %v1588_v13 = vrot.slane %v4680_v29, %v1555_v34  ;;  %v4213_v34 = vld [vmem:[%s4486_s26 + $0x1f8] sm:$0xff]  }
 0x986   : > { %v2045_v19 = vmax.f32 %v1831_v10, 0.0  ;;  %v2047_v20 = vmax.f32 %v1872_v11, 0.0  ;;  %v4207_v4 = vld [vmem:[%s4486_s26 + $0x1a8] sm:$0xff]   ;;  %v4208_v11 = vld [vmem:[%s4486_s26 + $0x170] sm:$0xff]   ;;  %v4212_v17 = vld [vmem:[%s4486_s26 + $0x178] sm:$0xff]  }
 0x988   : > { %v2061_v23 = vpack.c.bf16 %v2045_v19, %v2045_v19  ;;  %v2063_v24 = vpack.c.bf16 %v2047_v20, %v2047_v20  ;;  %3898 = vmatpush3.bf16.msra.mxu1 %v4190_v14  ;;  %3920 = vmatpush3.bf16.msra.mxu0 %v4191_v15  ;;  %v1596_v14 = vrot.slane %v4680_v29, %v1563_v35  ;;  %v4214_v35 = vld [vmem:[%s4486_s26 + $0x138] sm:$0xff]  }
 0x989   : > { %3899 = vmatprep.subr.bf16.mxu1 %v4192_v18  ;;  %3921 = vmatprep.subr.bf16.mxu0 %v4193_v7  ;;  %v1829_v15 = vadd.f32 %v4714_v5, %v1568_v8  ;;  %v4215_v19 = vld [vmem:[%s4486_s26 + $0x1b8] sm:$0xff]   ;;  %v4216_v5 = vld [vmem:[%s4486_s26 + $0x240] sm:$0xff]   ;;  %v1612_v8 = vrot.slane %v4680_v29, %v1579_v52 }
 0x98a   : > { %v1910_v38 = vpop.f32.mrb[20].mxu1  ;;  %v1951_v40 = vpop.f32.mrb[24].mxu0  ;;  %3215 = vmatprep.mubr.bf16.mxu1 %v2061_v23  ;;  %3255 = vmatprep.mubr.bf16.mxu0 %v2063_v24  ;;  %v4218_v24 = vld [vmem:[%s4486_s26 + $0x200] sm:$0xff]   ;;  %v4247_v52 = vld [vmem:[%s4486_s26 + $0x2b8] sm:$0xff]  }
 0x98b   : > { %v4728_v31 = vadd.f32 %v1910_v38, %v1584_v21  ;;  %v4730_v32 = vadd.f32 %v1951_v40, %v1592_v22  ;;  %v1912_v41 = vpop.f32.mrb[21].mxu1  ;;  %v1953_v42 = vpop.f32.mrb[25].mxu0  ;;  %v2044_v20 = vmax.f32 %v1829_v15, 0.0  ;;  %v4220_v38 = vld [vmem:[%s4486_s26 + $0x248] sm:$0xff]  }
 0x98c   : > { %3900 = vmatpush3.bf16.msra.mxu1 %v4194_v25  ;;  %3922 = vmatpush3.bf16.msra.mxu0 %v4195_v26  ;;  %v1914_v43 = vpop.f32.mrb[22].mxu1  ;;  %v1955_v44 = vpop.f32.mrb[26].mxu0  ;;  %v1913_v18 = vadd.f32 %v1912_v41, %v1588_v13  ;;  %v1954_v7 = vadd.f32 %v1953_v42, %v1596_v14  ;;  %v4221_v40 = vld [vmem:[%s4486_s26 + $0x2c8] sm:$0xff]   ;;  %v4248_v13 = vld [vmem:[%s4486_s26 + $0x340] sm:$0xff]  }
 0x98d   : > { %v1915_v48 = vpop.f32.mrb[23].mxu1  ;;  %v1956_v49 = vpop.f32.mrb[27].mxu0  ;;  %3901 = vmatprep.subr.bf16.mxu1 %v4196_v36  ;;  %3923 = vmatprep.subr.bf16.mxu0 %v4197_v37  ;;  %v2060_v25 = vpack.c.bf16 %v2044_v20, %v2044_v20  ;;  %v4219_v36 = vld [vmem:[%s4486_s26 + $0x280] sm:$0xff]   ;;  %v4222_v42 = vld [vmem:[%s4486_s26 + $0x208] sm:$0xff]   ;;  %v4224_v44 = vld [vmem:[%s4486_s26 + $0x250] sm:$0xff]   ;;  %v2050_v14 = vmax.f32 %v4730_v32, 0.0 }
 0x98e   : > { %v2049_v22 = vmax.f32 %v1913_v18, 0.0  ;;  %v2051_v23 = vmax.f32 %v1954_v7, 0.0  ;;  %v4223_v43 = vld [vmem:[%s4486_s26 + $0x288] sm:$0xff]   ;;  %v4228_v48 = vld [vmem:[%s4486_s26 + $0x258] sm:$0xff]   ;;  %v4257_v20 = vld [vmem:[%s4486_s26 + $0x3d0] sm:$0xff]  }
 0x98f   : > { %v4229_v49 = vld [vmem:[%s4486_s26 + $0x2d8] sm:$0xff]   ;;  %v4253_v32 = vld [vmem:[%s4486_s26 + $0x3c8] sm:$0xff]  }
 0x990   : > { %3902 = vmatpush3.bf16.msra.mxu1 %v4198_v45  ;;  %3924 = vmatpush3.bf16.msra.mxu0 %v4199_v46  ;;  %v2065_v37 = vpack.c.bf16 %v2049_v22, %v2049_v22  ;;  %v2067_v41 = vpack.c.bf16 %v2051_v23, %v2051_v23  ;;  %v4225_v45 = vld [vmem:[%s4486_s26 + $0x2d0] sm:$0xff]   ;;  %v4254_v7 = vld [vmem:[%s4486_s26 + $0x308] sm:$0xff]   ;;  %v4261_v22 = vld [vmem:[%s4486_s26 + $0x3d8] sm:$0xff]  }
 0x991   : > { %3903 = vmatprep.subr.bf16.mxu1 %v4200_v50  ;;  %3925 = vmatprep.subr.bf16.mxu0 %v4201_v53  ;;  %v4226_v46 = vld [vmem:[%s4486_s26 + $0x210] sm:$0xff]   ;;  %v4230_v50 = vld [vmem:[%s4486_s26 + $0x218] sm:$0xff]  }
 0x992   : > { %v1992_v59 = vpop.f32.mrb[24].mxu1  ;;  %v2033_v60 = vpop.f32.mrb[28].mxu0  ;;  %v4231_v53 = vld [vmem:[%s4486_s26 + $0x298] sm:$0xff]  }
 0x993   : > { %v4742_v61 = vadd.f32 %v1992_v59, %v1600_v54  ;;  %v4745_v62 = vadd.f32 %v2033_v60, %v4685_v30  ;;  %v4747_v63 = vpop.f32.mrb[25].mxu1  ;;  %v4749_v0 = vpop.f32.mrb[29].mxu0  ;;  %v1576_v30 = vrot.slane %v4690_v33, %v1575_v28  ;;  %v4210_v28 = vld [vmem:[%s4486_s26 + $0x130] sm:$0xff]   ;;  %v4232_v54 = vld [vmem:[%s4486_s26 + $0x260] sm:$0xff]   ;;  %v4237_v59 = vld [vmem:[%s4486_s26 + $0x2e8] sm:$0xff]  }
 0x994   : > { %3904 = vmatpush3.bf16.msra.mxu1 %v4202_v55  ;;  %3926 = vmatpush3.bf16.msra.mxu0 %v4203_v56  ;;  %v1996_v1 = vpop.f32.mrb[26].mxu1  ;;  %v2037_v2 = vpop.f32.mrb[30].mxu0  ;;  %v4211_v33 = vld [vmem:[%s4486_s26 + $0x1b0] sm:$0xff]   ;;  %v4233_v55 = vld [vmem:[%s4486_s26 + $0x2e0] sm:$0xff]   ;;  %v4238_v60 = vld [vmem:[%s4486_s26 + $0x228] sm:$0xff]  }
 0x995   : > { %v1997_v9 = vpop.f32.mrb[27].mxu1  ;;  %v2038_v10 = vpop.f32.mrb[31].mxu0  ;;  %3905 = vmatprep.subr.bf16.mxu1 %v4204_v57  ;;  %3927 = vmatprep.subr.bf16.mxu0 %v4205_v58  ;;  %v1870_v16 = vadd.f32 %v4716_v6, %v1576_v30  ;;  %v4217_v6 = vld [vmem:[%s4486_s26 + $0x2c0] sm:$0xff]   ;;  %v4236_v58 = vld [vmem:[%s4486_s26 + $0x268] sm:$0xff]   ;;  %v4240_v2 = vld [vmem:[%s4486_s26 + $0x270] sm:$0xff]  }
 0x996   : > { %v4234_v56 = vld [vmem:[%s4486_s26 + $0x220] sm:$0xff]   ;;  %v4239_v1 = vld [vmem:[%s4486_s26 + $0x2a8] sm:$0xff]   ;;  %v4242_v30 = vld [vmem:[%s4486_s26 + $0x230] sm:$0xff]  }
 0x997   : > { %v2046_v21 = vmax.f32 %v1870_v16, 0.0  ;;  %v4235_v57 = vld [vmem:[%s4486_s26 + $0x2a0] sm:$0xff]   ;;  %v4243_v9 = vld [vmem:[%s4486_s26 + $0x2b0] sm:$0xff]   ;;  %v4244_v10 = vld [vmem:[%s4486_s26 + $0x278] sm:$0xff]   ;;  %v2066_v16 = vpack.c.bf16 %v2050_v14, %v2050_v14 }
 0x998   : > { %3906 = vmatpush3.bf16.msra.mxu1 %v4206_v3  ;;  %3928 = vmatpush3.bf16.msra.mxu0 %v4207_v4  ;;  %v4241_v3 = vld [vmem:[%s4486_s26 + $0x2f0] sm:$0xff]   ;;  %v1604_v4 = vrot.slane %v4680_v29, %v1571_v51  ;;  %v2036_v51 = vadd.f32 %v4749_v0, %v1612_v8  ;;  %v2048_v29 = vmax.f32 %v4728_v31, 0.0  ;;  %v4251_v31 = vld [vmem:[%s4486_s26 + $0x380] sm:$0xff]   ;;  %v4262_v23 = vld [vmem:[%s4486_s26 + $0x318] sm:$0xff]  }
 0x999   : > { %3907 = vmatprep.subr.bf16.mxu1 %v4208_v11  ;;  %3929 = vmatprep.subr.bf16.mxu0 %v4209_v12  ;;  %v2062_v26 = vpack.c.bf16 %v2046_v21, %v2046_v21  ;;  %v4245_v11 = vld [vmem:[%s4486_s26 + $0x2f8] sm:$0xff]   ;;  %v4258_v21 = vld [vmem:[%s4486_s26 + $0x310] sm:$0xff]  }
 0x99a   : > { %v1995_v12 = vadd.f32 %v4747_v63, %v1604_v4  ;;  %v2055_v15 = vmax.f32 %v2036_v51, 0.0  ;;  %v4250_v63 = vld [vmem:[%s4486_s26 + $0x300] sm:$0xff]   ;;  %v2064_v0 = vpack.c.bf16 %v2048_v29, %v2048_v29 }
 0x99c   : > { %3908 = vmatpush3.bf16.msra.mxu1 %v4210_v28  ;;  %3930 = vmatpush3.bf16.msra.mxu0 %v4211_v33  ;;  %v4249_v28 = vld [vmem:[%s4486_s26 + $0x3c0] sm:$0xff]   ;;  %v2053_v33 = vmax.f32 %v1995_v12, 0.0  ;;  %v2071_v18 = vpack.c.bf16 %v2055_v15, %v2055_v15 }
 0x99d   : > { %3909 = vmatprep.subr.bf16.mxu1 %v4212_v17  ;;  %3931 = vmatprep.subr.bf16.mxu0 %v4213_v34  ;;  %v4252_v17 = vld [vmem:[%s4486_s26 + $0x348] sm:$0xff]  }
 0x99e   : > { %v2069_v34 = vpack.c.bf16 %v2053_v33, %v2053_v33 }
 0x9a0   : > { %3910 = vmatpush3.bf16.msra.mxu1 %v4214_v35  ;;  %3932 = vmatpush3.bf16.msra.mxu0 %v4215_v19  ;;  %v4255_v35 = vld [vmem:[%s4486_s26 + $0x388] sm:$0xff]   ;;  %v4256_v19 = vld [vmem:[%s4486_s26 + $0x350] sm:$0xff]  }
 0x9a1   : > { %3939 = vmatprep.subr.bf16.mxu1 %v4216_v5  ;;  %3961 = vmatprep.subr.bf16.mxu0 %v4217_v6  ;;  %v4259_v5 = vld [vmem:[%s4486_s26 + $0x390] sm:$0xff]   ;;  %v4260_v6 = vld [vmem:[%s4486_s26 + $0x358] sm:$0xff]  }
 0x9a3   : > { %3216 = vmatmul.mubr.bf16.vlgmr.msra.gmra.mrb[32].mxu1 %v2060_v25  ;;  %3256 = vmatmul.mubr.bf16.vlgmr.msra.gmra.mrb[36].mxu0 %v2062_v26  ;;  %v4264_v25 = vld [vmem:[%s4486_s26 + $0x360] sm:$0xff]  }
 0x9a4   : > { %3940 = vmatpush3.bf16.msra.mxu1 %v4218_v24  ;;  %3295 = vmatprep.mubr.bf16.mxu1 %v2065_v37  ;;  %v4263_v24 = vld [vmem:[%s4486_s26 + $0x398] sm:$0xff]   ;;  %v4265_v26 = vld [vmem:[%s4486_s26 + $0x3e0] sm:$0xff]  }
 0x9a5   : > { %3962 = vmatpush3.bf16.msra.mxu0 %v4219_v36  ;;  %3335 = vmatprep.mubr.bf16.mxu0 %v2067_v41  ;;  %v4266_v36 = vld [vmem:[%s4486_s26 + $0x320] sm:$0xff]   ;;  %v4270_v41 = vld [vmem:[%s4486_s26 + $0x328] sm:$0xff]  }
 0x9a6   : > { %3941 = vmatprep.subr.bf16.mxu1 %v4220_v38  ;;  %3963 = vmatprep.subr.bf16.mxu0 %v4221_v40  ;;  %v4267_v37 = vld [vmem:[%s4486_s26 + $0x3a0] sm:$0xff]   ;;  %v4268_v38 = vld [vmem:[%s4486_s26 + $0x368] sm:$0xff]  }
 0x9a7   : > { %v4269_v40 = vld [vmem:[%s4486_s26 + $0x3e8] sm:$0xff]  }
 0x9a8   : > { %3942 = vmatpush3.bf16.msra.mxu1 %v4222_v42  ;;  %v4271_v42 = vld [vmem:[%s4486_s26 + $0x3a8] sm:$0xff]  }
 0x9a9   : > { %3964 = vmatpush3.bf16.msra.mxu0 %v4223_v43  ;;  %3943 = vmatprep.subr.bf16.mxu1 %v4224_v44  ;;  %v4272_v43 = vld [vmem:[%s4486_s26 + $0x370] sm:$0xff]  }
 0x9aa   : > { %3965 = vmatprep.subr.bf16.mxu0 %v4225_v45  ;;  %v4273_v44 = vld [vmem:[%s4486_s26 + $0x3f0] sm:$0xff]  }
 0x9ab   : > { %v4274_v45 = vld [vmem:[%s4486_s26 + $0x330] sm:$0xff]  }
 0x9ac   : > { %3944 = vmatpush3.bf16.msra.mxu1 %v4226_v46  ;;  %v4275_v46 = vld [vmem:[%s4486_s26 + $0x3b0] sm:$0xff]  }
 0x9ad   : > { %3966 = vmatpush3.bf16.msra.mxu0 %v4227_v47  ;;  %3945 = vmatprep.subr.bf16.mxu1 %v4228_v48  ;;  %v4276_v47 = vld [vmem:[%s4486_s26 + $0x378] sm:$0xff]  }
 0x9ae   : > { %3967 = vmatprep.subr.bf16.mxu0 %v4229_v49  ;;  %v4277_v48 = vld [vmem:[%s4486_s26 + $0x3f8] sm:$0xff]  }
 0x9af   : > { %v4278_v49 = vld [vmem:[%s4486_s26 + $0x338] sm:$0xff]  }
 0x9b0   : > { %3946 = vmatpush3.bf16.msra.mxu1 %v4230_v50  ;;  %v2052_v50 = vmax.f32 %v4742_v61, 0.0 }
 0x9b1   : > { %3968 = vmatpush3.bf16.msra.mxu0 %v4231_v53  ;;  %3947 = vmatprep.subr.bf16.mxu1 %v4232_v54  ;;  %v4279_v53 = vld [vmem:[%s4486_s26 + $0x3b8] sm:$0xff]   ;;  %v2054_v54 = vmax.f32 %v4745_v62, 0.0 }
 0x9b2   : > { %3969 = vmatprep.subr.bf16.mxu0 %v4233_v55  ;;  %v2068_v55 = vpack.c.bf16 %v2052_v50, %v2052_v50 }
 0x9b4   : > { %3948 = vmatpush3.bf16.msra.mxu1 %v4234_v56  ;;  %v2070_v56 = vpack.c.bf16 %v2054_v54, %v2054_v54 }
 0x9b5   : > { %3970 = vmatpush3.bf16.msra.mxu0 %v4235_v57  ;;  %3949 = vmatprep.subr.bf16.mxu1 %v4236_v58 }
 0x9b6   : > { %3971 = vmatprep.subr.bf16.mxu0 %v4237_v59  ;;  %v3685_v59 = vld [vmem:[%s751_s0] ss:$0 sm:$0xff] }
 0x9b8   : > { %3950 = vmatpush3.bf16.msra.mxu1 %v4238_v60 }
 0x9b9   : > { %3972 = vmatpush3.bf16.msra.mxu0 %v4239_v1  ;;  %3951 = vmatprep.subr.bf16.mxu1 %v4240_v2 }
 0x9ba   : > { %3973 = vmatprep.subr.bf16.mxu0 %v4241_v3 }
 0x9bc   : > { %3952 = vmatpush3.bf16.msra.mxu1 %v4242_v30 }
 0x9bd   : > { %3974 = vmatpush3.bf16.msra.mxu0 %v4243_v9  ;;  %3953 = vmatprep.subr.bf16.mxu1 %v4244_v10 }
 0x9be   : > { %3975 = vmatprep.subr.bf16.mxu0 %v4245_v11 }
 0x9c0   : > { %3954 = vmatpush3.bf16.msra.mxu1 %v4246_v27 }
 0x9c1   : > { %3976 = vmatpush3.bf16.msra.mxu0 %v4247_v52  ;;  %3983 = vmatprep.subr.bf16.mxu1 %v4248_v13 }
 0x9c2   : > { %4005 = vmatprep.subr.bf16.mxu0 %v4249_v28 }
 0x9c3   : > { %3296 = vmatmul.mubr.bf16.vlgmr.msra.gmra.mrb[36].mxu1 %v2064_v0 }
 0x9c4   : > { %3336 = vmatmul.mubr.bf16.vlgmr.msra.gmra.mrb[40].mxu0 %v2066_v16  ;;  %3984 = vmatpush3.bf16.msra.mxu1 %v4250_v63 }
 0x9c5   : > { %3375 = vmatprep.mubr.bf16.mxu1 %v2069_v34  ;;  %4006 = vmatpush3.bf16.msra.mxu0 %v4251_v31 }
 0x9c6   : > { %3415 = vmatprep.mubr.bf16.mxu0 %v2071_v18  ;;  %3985 = vmatprep.subr.bf16.mxu1 %v4252_v17 }
 0x9c7   : > { %4007 = vmatprep.subr.bf16.mxu0 %v4253_v32 }
 0x9c8   : > { %3986 = vmatpush3.bf16.msra.mxu1 %v4254_v7 }
 0x9c9   : > { %4008 = vmatpush3.bf16.msra.mxu0 %v4255_v35  ;;  %3987 = vmatprep.subr.bf16.mxu1 %v4256_v19 }
 0x9ca   : > { %4009 = vmatprep.subr.bf16.mxu0 %v4257_v20 }
 0x9cc   : > { %3988 = vmatpush3.bf16.msra.mxu1 %v4258_v21 }
 0x9cd   : > { %4010 = vmatpush3.bf16.msra.mxu0 %v4259_v5  ;;  %3989 = vmatprep.subr.bf16.mxu1 %v4260_v6 }
 0x9ce   : > { %4011 = vmatprep.subr.bf16.mxu0 %v4261_v22 }
 0x9d0   : > { %3990 = vmatpush3.bf16.msra.mxu1 %v4262_v23 }
 0x9d1   : > { %4012 = vmatpush3.bf16.msra.mxu0 %v4263_v24  ;;  %3991 = vmatprep.subr.bf16.mxu1 %v4264_v25 }
 0x9d2   : > { %4013 = vmatprep.subr.bf16.mxu0 %v4265_v26 }
 0x9d4   : > { %3992 = vmatpush3.bf16.msra.mxu1 %v4266_v36 }
 0x9d5   : > { %4014 = vmatpush3.bf16.msra.mxu0 %v4267_v37  ;;  %3993 = vmatprep.subr.bf16.mxu1 %v4268_v38 }
 0x9d6   : > { %4015 = vmatprep.subr.bf16.mxu0 %v4269_v40 }
 0x9d8   : > { %3994 = vmatpush3.bf16.msra.mxu1 %v4270_v41 }
 0x9d9   : > { %4016 = vmatpush3.bf16.msra.mxu0 %v4271_v42  ;;  %3995 = vmatprep.subr.bf16.mxu1 %v4272_v43 }
 0x9da   : > { %4017 = vmatprep.subr.bf16.mxu0 %v4273_v44 }
 0x9dc   : > { %3996 = vmatpush3.bf16.msra.mxu1 %v4274_v45 }
 0x9dd   : > { %4018 = vmatpush3.bf16.msra.mxu0 %v4275_v46  ;;  %3997 = vmatprep.subr.bf16.mxu1 %v4276_v47 }
 0x9de   : > { %4019 = vmatprep.subr.bf16.mxu0 %v4277_v48 }
 0x9e0   : > { %3998 = vmatpush3.bf16.msra.mxu1 %v4278_v49 }
 0x9e1   : > { %4020 = vmatpush3.bf16.msra.mxu0 %v4279_v53 }
 0x9e3   : > { %3376 = vmatmul.mubr.bf16.vlgmr.msra.gmra.mrb[40].mxu1 %v2068_v55  ;;  %v3815_v55 = vld [vmem:[%s763_s7] ss:$0 sm:$0xff] }
 0x9e4   : > { %3416 = vmatmul.mubr.bf16.vlgmr.msra.gmra.mrb[44].mxu0 %v2070_v56 }
 0xa56   : > { %v3867_v57 = vpop.f32.mrb[28].mxu1  ;;  %v3889_v58 = vpop.f32.mrb[32].mxu0 }
 0xa57   : > { %v3868_v61 = vpop.f32.mrb[29].mxu1  ;;  %v3890_v60 = vpop.f32.mrb[33].mxu0 }
 0xa58   : > { %v3869_v1 = vadd.f32 %v3868_v61, %v3867_v57  ;;  %v3891_v2 = vadd.f32 %v3890_v60, %v3889_v58  ;;  %v3870_v3 = vpop.f32.mrb[30].mxu1  ;;  %v3892_v62 = vpop.f32.mrb[34].mxu0  ;;  %v3458_v58 = vld [vmem:[%s4950_s27] sm:$0xff] (!%p3816_p5) }
 0xa59   : > { %v3871_v4 = vpop.f32.mrb[31].mxu1  ;;  %v3893_v8 = vpop.f32.mrb[35].mxu0 }
 0xa5a   : > { %v3138_v30 = vadd.f32 %v3869_v1, %v3685_v59 }
 0xa5c   : > { %v3178_v9 = vadd.f32 %v3891_v2, %v3138_v30 }
 0xa76   : > { %v3911_v10 = vpop.f32.mrb[32].mxu1  ;;  %v3933_v11 = vpop.f32.mrb[36].mxu0 }
 0xa77   : > { %v3912_v12 = vpop.f32.mrb[33].mxu1  ;;  %v3934_v51 = vpop.f32.mrb[37].mxu0 }
 0xa78   : > { %v3913_v27 = vadd.f32 %v3912_v12, %v3911_v10  ;;  %v3935_v29 = vadd.f32 %v3934_v51, %v3933_v11  ;;  %v3914_v52 = vpop.f32.mrb[34].mxu1  ;;  %v3936_v13 = vpop.f32.mrb[38].mxu0 }
 0xa79   : > { %v3915_v14 = vpop.f32.mrb[35].mxu1  ;;  %v3937_v28 = vpop.f32.mrb[39].mxu0 }
 0xa7a   : > { %v3218_v33 = vadd.f32 %v3913_v27, %v3178_v9 }
 0xa7c   : > { %v3258_v15 = vadd.f32 %v3935_v29, %v3218_v33 }
 0xa96   : > { %v3955_v63 = vpop.f32.mrb[36].mxu1 }
 0xa97   : > { %v3977_v0 = vpop.f32.mrb[40].mxu0  ;;  %v3956_v31 = vpop.f32.mrb[37].mxu1 }
 0xa98   : > { %v3957_v16 = vadd.f32 %v3956_v31, %v3955_v63  ;;  %v3978_v17 = vpop.f32.mrb[41].mxu0  ;;  %v3958_v34 = vpop.f32.mrb[38].mxu1 }
 0xa99   : > { %v3979_v32 = vadd.f32 %v3978_v17, %v3977_v0  ;;  %v3980_v18 = vpop.f32.mrb[42].mxu0  ;;  %v3959_v7 = vpop.f32.mrb[39].mxu1 }
 0xa9a   : > { %v3298_v35 = vadd.f32 %v3957_v16, %v3258_v15  ;;  %v3981_v19 = vpop.f32.mrb[43].mxu0 }
 0xa9c   : > { %v3338_v20 = vadd.f32 %v3979_v32, %v3298_v35 }
 0xab6   : > { %v3999_v21 = vpop.f32.mrb[40].mxu1 }
 0xab7   : > { %v4021_v5 = vpop.f32.mrb[44].mxu0  ;;  %v4000_v6 = vpop.f32.mrb[41].mxu1 }
 0xab8   : > { %v4001_v22 = vadd.f32 %v4000_v6, %v3999_v21  ;;  %v4022_v23 = vpop.f32.mrb[45].mxu0  ;;  %v4002_v24 = vpop.f32.mrb[42].mxu1 }
 0xab9   : > { %v4023_v25 = vadd.f32 %v4022_v23, %v4021_v5  ;;  %v4024_v26 = vpop.f32.mrb[46].mxu0  ;;  %v4003_v36 = vpop.f32.mrb[43].mxu1 }
 0xaba   : > { %v3378_v37 = vadd.f32 %v4001_v22, %v3338_v20  ;;  %v4025_v38 = vpop.f32.mrb[47].mxu0 }
 0xabc   : > { %v3418_v40 = vadd.f32 %v4023_v25, %v3378_v37 }
 0xabe   : > { %v3423_v41 = vadd.f32 %v3418_v40, %v4623_v39  ;;  %v3814_v39 = vld [vmem:[%s760_s12] ss:$0 sm:$0xff] }
 0xac0   : > { %v3426_v42 = vsel %vm1139_vm5, %v3423_v41, 0.0 }
 0xac1   : > { %3427 = vadd.xlane.f32.xlu0 %v3426_v42 }
 0xb4e   : > { %v3428_v43 = vpop.xlane.xlu0 %3427 }
 0xb4f   : > { %v3429_v44 = vmul.f32 0.0625, %v3428_v43 }
 0xb51   : > { %v3430_v45 = vsub.f32 %v3423_v41, %v3429_v44 }
 0xb53   : > { %v3431_v46 = vmul.f32 %v3430_v45, %v3430_v45 }
 0xb55   : > { %v3432_v47 = vsel %vm1139_vm5, %v3431_v46, 0.0 }
 0xb56   : > { %3433 = vadd.xlane.f32.xlu1 %v3432_v47 }
 0xbe3   : > { %v3434_v48 = vpop.xlane.xlu1 %3433 }
 0xbe4   : > { %v3435_v49 = vmul.f32 0.0625, %v3434_v48 }
 0xbe6   : > { %v3436_v50 = vadd.f32 1e-05, %v3435_v49 }
 0xbe8   : > { %4288 = vrsqrt.f32 %v3436_v50 }
 0xbf2   : > { %v4289_v53 = vpop.eup %4288 }
 0xbf3   : > { %v3438_v54 = vmul.f32 %v4289_v53, %v3430_v45  ;;  %3457 = sbr.rel (%p3816_p5) target bundleno = 3068 (0xbfc), region = 104 }
 0xbf5   : > { %v3445_v56 = vmul.f32 %v3814_v39, %v3438_v54 }
 0xbf7   : > { %v3452_v57 = vadd.f32 %v3815_v55, %v3445_v56 }
 0xbf9   : > { %3453 = vst.msk [vmem:[#allocation2] sm:$0xff] %vm1139_vm5, %v3452_v57  ;;  %v3459_v59 = vadd.f32 (!%p3816_p5), %v3458_v58, %v3452_v57 }
 0xbfb   : > { %3460 = vst.msk [vmem:[#allocation3] sm:$0xff] %vm1139_vm5, %v3459_v59 }
 0xbfc PF: > { %p4117_p6 = scmp.eq.s32.totalorder %s4443_s30, 1  ;;  %s4336_s12 = smov [#allocation3]  }
 0xbfd   : > { %s3468_s20 = sshll.u32 %s4336_s12, 4  ;;  %s3469_s20 = int_to_ptr.vmem [resolvable:$true] %s3468_s20 }
 0xbfe   : > { %s4290_s7 = scalar_lea.vmem %s3469_s20, 128  ;;  %p4297_p10 = scmp.lt.s32.totalorder %s3469_s20, %s3469_s20 }
 0xbff   : > { %p4291_p7 = scmp.ne.s32.totalorder %s3469_s20, %s4290_s7  ;;  %p4298_p11 = scmp.lt.s32.totalorder %s4290_s7, %s4290_s7 }
 0xc01   : > { %p4292_p8 = pnand %p4291_p7, %p4117_p6  ;;  %p4299_p12 = por %p4298_p11, %p4297_p10 }
 0xc03   : > { %p4293_p9 = pneg %p4292_p8 }
 0xc05   : > { %p4300_p13 = pnand %p4299_p12, %p4293_p9 }
 0xc07   : > { %4303 = shalt.err (!%p4300_p13)
}
 0xc08   : > { %s4951_s5 = sld [smem:[#allocation18_spill]] }
 0xc0e   : > { %s4304_s19 = scalar_lea.hbm %s4951_s5, 128 }
 0xc0f   : > { %p4305_p0 = scmp.ne.s32.totalorder %s4951_s5, %s4304_s19  ;;  %p4310_p3 = scmp.lt.u32.totalorder %s4304_s19, %s4951_s5 }
 0xc11   : > { %p4306_p1 = pnand %p4305_p0, %p4117_p6 }
 0xc13   : > { %p4307_p2 = pneg %p4306_p1 }
 0xc15   : > { %p4312_p4 = pnand %p4310_p3, %p4307_p2 }
 0xc17   : > { %4315 = shalt.err (!%p4312_p4)
}
 0xc18   : > { %4114 = dma.vmem_to_hbm [thread:$0]  (%p4117_p6), %s3469_s20, 128, %s4951_s5, [#allocation4]  }
 0xc19   : > { %4321 = dma.done.wait (%p4117_p6), [#allocation4], 128  }
 0xc1a   : > { %4323 = vsyncadd (%p4117_p6), [#allocation4], 4294967168 }
 0xc1b PF: > { %s4952_s26 = sld [smem:[#allocation6_spill]] }
 0xc21   : > { %s30_s0 = sadd.s32 1, %s4952_s26  }
 0xc22   : > { %p27_p5 = scmp.ge.s32.totalorder %s30_s0, 4  }
 0xc24   :  { %29 = sbr.rel (!%p27_p5) target bundleno = 13 (0xd), region = 168 }
 0xc2b   :  { %3481 = vsyncpa [#allocation4], 1 }
 0xc2c   :  { %3483 = vsyncpa [#allocation4 + $0x1], 1 }

</bundles_post_ra>
